<compile_context>
chip_gen: v5e
topology: v5e:2x2
jax: 0.10.0
libtpu: 0.0.40
codegen_flags: <defaults>
</compile_context>

<pallas_src>
import functools

import jax
import jax.numpy as jnp
from jax.experimental import pallas as pl
from jax.experimental.pallas import tpu as pltpu


def _coco_kernel(x_ref, w1t_ref, w2t_ref, wct_ref, bc_ref, out_ref, acc_ref,
                 *, inv_hw):
    """Grid = (batch blocks, spatial chunks).  Spatial axis is a reduction.

    x_ref  : (Bt, C, THW)  feature-map chunk (channels on sublanes, spatial on lanes)
    w1t_ref: (C, Cr)       SEBlock fc1 weight, pre-transposed (no bias)
    w2t_ref: (Cr, C)       SEBlock fc2 weight, pre-transposed (no bias)
    wct_ref: (C, NCp)      classifier Linear weight, pre-transposed + lane-padded
    bc_ref : (1, NCp)      classifier Linear bias, lane-padded
    out_ref: (Bt, NCp)     logits (written on the last spatial chunk only)
    acc_ref: (Bt, C) f32   running spatial sum (VMEM scratch)
    """
    k = pl.program_id(1)

    @pl.when(k == 0)
    def _():
        acc_ref[...] = jnp.zeros_like(acc_ref)

    # Partial spatial sum for this chunk (zero-padded tail chunks add nothing).
    acc_ref[...] += jnp.sum(x_ref[...], axis=-1)                      # (Bt, C)

    @pl.when(k == pl.num_programs(1) - 1)
    def _():
        # SE squeeze: AdaptiveAvgPool2d(1)
        pooled = acc_ref[...] * inv_hw                                 # (Bt, C)
        # SE excitation: Linear -> ReLU -> Linear -> Sigmoid (MXU matmuls)
        h = jnp.maximum(
            jnp.dot(pooled, w1t_ref[...],
                    preferred_element_type=jnp.float32), 0.0)          # (Bt, Cr)
        s = jax.nn.sigmoid(
            jnp.dot(h, w2t_ref[...],
                    preferred_element_type=jnp.float32))               # (Bt, C)
        # SE scale + global_pool fused:  mean(x * s, spatial) == s * mean(x)
        pooled2 = pooled * s                                           # (Bt, C)
        # classifier: Dropout(0.2) is identity in eval; Linear(C, NC)
        logits = jnp.dot(pooled2, wct_ref[...],
                         preferred_element_type=jnp.float32)           # (Bt, NCp)
        out_ref[...] = (logits + bc_ref[...]).astype(out_ref.dtype)


def _round_up(x, m):
    return (x + m - 1) // m * m


@functools.partial(jax.jit, static_argnames=("block_b", "block_hw"))
def coco_classifier_forward(x, w1, w2, wc, bc, *, block_b=None, block_hw=None):
    """x: (B, C, H, W) float32 feature map. Returns (B, num_classes) logits."""
    B, C, H, W = x.shape
    HW = H * W
    Cr = w1.shape[0]
    NC = wc.shape[0]

    # --- tiling ------------------------------------------------------------
    # Spatial chunk (lane axis): multiple of 128, as large as the per-buffer
    # budget allows at the minimum batch block of 8, capped at 2048 lanes.
    per_buffer_budget = 6 * 1024 * 1024                    # bytes for one x block
    if block_hw is None:
        hw_full = _round_up(HW, 128)
        max_hw = max(128, (per_buffer_budget // (8 * C * 4)) // 128 * 128)
        block_hw = min(hw_full, max_hw, 2048)
    HW_pad = _round_up(HW, block_hw)

    # Batch block (sublane axis of the pooled intermediates): multiple of 8,
    # sized so the double-buffered x block stays well under every generation's
    # scoped-VMEM default (v7x has only 64 MiB physical VMEM).
    if block_b is None:
        bt = per_buffer_budget // (C * block_hw * 4)
        bt = max(8, min(256, (bt // 8) * 8))
        # Aim for >=2 batch grid steps when the batch allows it so v7x's two
        # TensorCores both get work (the batch axis is the "parallel" one).
        half_b = _round_up(max(8, _round_up(B, 8) // 2), 8)
        block_b = min(bt, half_b)
    B_pad = _round_up(B, block_b)

    # Classifier output padded to a lane multiple -> unmasked vst on writeback.
    NC_pad = _round_up(NC, 128)

    # --- host-side (one-time) layout prep ----------------------------------
    x_flat = x.reshape(B, C, HW)
    x_flat = jnp.pad(x_flat, ((0, B_pad - B), (0, 0), (0, HW_pad - HW)))
    w1t = w1.T                                                     # (C, Cr)
    w2t = w2.T                                                     # (Cr, C)
    wct = jnp.pad(wc.T, ((0, 0), (0, NC_pad - NC)))                # (C, NCp)
    bc2 = jnp.pad(bc.reshape(1, NC), ((0, 0), (0, NC_pad - NC)))   # (1, NCp)

    grid = (B_pad // block_b, HW_pad // block_hw)

    grid_spec = pltpu.PrefetchScalarGridSpec(
        num_scalar_prefetch=0,
        grid=grid,
        in_specs=[
            pl.BlockSpec((block_b, C, block_hw), lambda b, k: (b, 0, k)),  # x
            pl.BlockSpec((C, Cr), lambda b, k: (0, 0)),                    # SE fc1^T
            pl.BlockSpec((Cr, C), lambda b, k: (0, 0)),                    # SE fc2^T
            pl.BlockSpec((C, NC_pad), lambda b, k: (0, 0)),                # cls W^T
            pl.BlockSpec((1, NC_pad), lambda b, k: (0, 0)),                # cls bias
        ],
        out_specs=pl.BlockSpec((block_b, NC_pad), lambda b, k: (b, 0)),
        scratch_shapes=[pltpu.VMEM((block_b, C), jnp.float32)],
    )

    out = pl.pallas_call(
        functools.partial(_coco_kernel, inv_hw=1.0 / HW),
        out_shape=jax.ShapeDtypeStruct((B_pad, NC_pad), jnp.float32),
        grid_spec=grid_spec,
        compiler_params=pltpu.CompilerParams(
            dimension_semantics=("parallel", "arbitrary"),
            vmem_limit_bytes=32 * 1024 * 1024,
        ),
    )(x_flat, w1t, w2t, wct, bc2)

    return out[:B, :NC]


def _reference_forward(x, w1, w2, wc, bc):
    """Pure-JAX reference matching the PyTorch forward (eval mode)."""
    pooled = x.mean(axis=(2, 3))                         # (B, C)  SE squeeze
    h = jnp.maximum(pooled @ w1.T, 0.0)                  # (B, C//r)
    s = jax.nn.sigmoid(h @ w2.T)                         # (B, C)
    feat = x * s[:, :, None, None]                       # SE scale
    pooled2 = feat.mean(axis=(2, 3))                     # global_pool
    return pooled2 @ wc.T + bc                           # classifier (dropout = id)


if __name__ == "__main__":
    # Small synthetic shapes: batch=2, feature_dim=128, spatial=16x16,
    # SE reduction=16 (-> 8 hidden), num_classes=10.
    B, C, H, W = 2, 128, 16, 16
    reduction = 16
    Cr = C // reduction
    NC = 10

    key = jax.random.PRNGKey(0)
    kx, k1, k2, k3, k4 = jax.random.split(key, 5)

    x = jax.random.normal(kx, (B, C, H, W), dtype=jnp.float32)
    w1 = jax.random.normal(k1, (Cr, C), dtype=jnp.float32) * 0.05   # SE fc1 (no bias)
    w2 = jax.random.normal(k2, (C, Cr), dtype=jnp.float32) * 0.05   # SE fc2 (no bias)
    wc = jax.random.normal(k3, (NC, C), dtype=jnp.float32) * 0.05   # classifier weight
    bc = jax.random.normal(k4, (NC,), dtype=jnp.float32) * 0.05     # classifier bias

    out = coco_classifier_forward(x, w1, w2, wc, bc)
    out = jax.block_until_ready(out)

    ref = _reference_forward(x, w1, w2, wc, bc)
    assert out.shape == (B, NC), out.shape
    assert jnp.allclose(out, ref, atol=1e-4, rtol=1e-4), (
        f"max abs err {jnp.max(jnp.abs(out - ref))}")

    print("KERNEL_OK")
</pallas_src>

<mosaic_0001>
module attributes {stable_mosaic.version = 11 : i64} {
  func.func @_coco_kernel(%arg0: i32, %arg1: i32, %arg2: memref<8x128x256xf32, #tpu.memory_space<vmem>>, %arg3: memref<128x8xf32, #tpu.memory_space<vmem>>, %arg4: memref<8x128xf32, #tpu.memory_space<vmem>>, %arg5: memref<128x128xf32, #tpu.memory_space<vmem>>, %arg6: memref<1x128xf32, #tpu.memory_space<vmem>>, %arg7: memref<8x128xf32, #tpu.memory_space<vmem>>, %arg8: memref<8x128xf32, #tpu.memory_space<vmem>>) attributes {dimension_semantics = [#tpu.dimension_semantics<parallel>, #tpu.dimension_semantics<arbitrary>], iteration_bounds = array<i64: 1, 1>, scalar_prefetch = 0 : i64, scratch_operands = 1 : i64, tpu.core_type = #tpu.core_type<tc>, window_params = [{transform_indices = @transform_0, window_bounds = array<i64: 8, 128, 256>}, {pipeline_mode = #tpu.pipeline_mode<synchronous>, transform_indices = @transform_1, window_bounds = array<i64: 128, 8>}, {pipeline_mode = #tpu.pipeline_mode<synchronous>, transform_indices = @transform_2, window_bounds = array<i64: 8, 128>}, {pipeline_mode = #tpu.pipeline_mode<synchronous>, transform_indices = @transform_3, window_bounds = array<i64: 128, 128>}, {pipeline_mode = #tpu.pipeline_mode<synchronous>, transform_indices = @transform_4, window_bounds = array<i64: 1, 128>}, {transform_indices = @transform_5, window_bounds = array<i64: 8, 128>}]} {
    %c0_i32 = arith.constant 0 : i32
    %0 = arith.cmpi eq, %arg1, %c0_i32 : i32
    %1 = arith.extui %0 : i1 to i32
    %c0_i32_0 = arith.constant 0 : i32
    %2 = arith.cmpi ne, %1, %c0_i32_0 : i32
    scf.if %2 {
      %cst_9 = arith.constant 0.000000e+00 : f32
      %11 = vector.broadcast %cst_9 : f32 to vector<8x128xf32>
      %c0_10 = arith.constant 0 : index
      %c0_11 = arith.constant 0 : index
      %12 = vector.load %arg8[%c0_10, %c0_11] : memref<8x128xf32, #tpu.memory_space<vmem>>, vector<8x128xf32>
      tpu.vector_store %arg8[%c0_10, %c0_11], %11 {strides = array<i32>} : memref<8x128xf32, #tpu.memory_space<vmem>>, vector<8x128xf32>,
    } else {
    }
    %c0 = arith.constant 0 : index
    %c0_1 = arith.constant 0 : index
    %3 = vector.load %arg8[%c0, %c0_1] : memref<8x128xf32, #tpu.memory_space<vmem>>, vector<8x128xf32>
    %c0_2 = arith.constant 0 : index
    %c0_3 = arith.constant 0 : index
    %c0_4 = arith.constant 0 : index
    %4 = vector.load %arg2[%c0_2, %c0_3, %c0_4] : memref<8x128x256xf32, #tpu.memory_space<vmem>>, vector<8x128x256xf32>
    %cst = arith.constant dense<0.000000e+00> : vector<8x128xf32>
    %5 = vector.multi_reduction <add>, %4, %cst [2] : vector<8x128x256xf32> to vector<8x128xf32>
    %6 = arith.addf %3, %5 : vector<8x128xf32>
    %c0_5 = arith.constant 0 : index
    %c0_6 = arith.constant 0 : index
    %7 = vector.load %arg8[%c0_5, %c0_6] : memref<8x128xf32, #tpu.memory_space<vmem>>, vector<8x128xf32>
    tpu.vector_store %arg8[%c0_5, %c0_6], %6 {strides = array<i32>} : memref<8x128xf32, #tpu.memory_space<vmem>>, vector<8x128xf32>,
    %c0_i32_7 = arith.constant 0 : i32
    %8 = arith.cmpi eq, %arg1, %c0_i32_7 : i32
    %9 = arith.extui %8 : i1 to i32
    %c0_i32_8 = arith.constant 0 : i32
    %10 = arith.cmpi ne, %9, %c0_i32_8 : i32
    scf.if %10 {
      %c0_9 = arith.constant 0 : index
      %c0_10 = arith.constant 0 : index
      %11 = vector.load %arg8[%c0_9, %c0_10] : memref<8x128xf32, #tpu.memory_space<vmem>>, vector<8x128xf32>
      %cst_11 = arith.constant 3.906250e-03 : f32
      %12 = vector.broadcast %cst_11 : f32 to vector<8x128xf32>
      %13 = arith.mulf %11, %12 : vector<8x128xf32>
      %c0_12 = arith.constant 0 : index
      %c0_13 = arith.constant 0 : index
      %14 = vector.load %arg3[%c0_12, %c0_13] : memref<128x8xf32, #tpu.memory_space<vmem>>, vector<128x8xf32>
      %cst_14 = arith.constant dense<0.000000e+00> : vector<8x8xf32>
      %15 = tpu.matmul %13, %14, %cst_14 {dimension_numbers = #tpu.dot_dimension_numbers<[1], [0], [0], [1], [0, 0, 1, 1], [], []>} : vector<8x128xf32>, vector<128x8xf32>, vector<8x8xf32> -> vector<8x8xf32>
      %cst_15 = arith.constant 0.000000e+00 : f32
      %16 = vector.broadcast %cst_15 : f32 to vector<8x8xf32>
      %17 = arith.maximumf %15, %16 : vector<8x8xf32>
      %c0_16 = arith.constant 0 : index
      %c0_17 = arith.constant 0 : index
      %18 = vector.load %arg4[%c0_16, %c0_17] : memref<8x128xf32, #tpu.memory_space<vmem>>, vector<8x128xf32>
      %cst_18 = arith.constant dense<0.000000e+00> : vector<8x128xf32>
      %19 = tpu.matmul %17, %18, %cst_18 {dimension_numbers = #tpu.dot_dimension_numbers<[1], [0], [0], [1], [0, 0, 1, 1], [], []>} : vector<8x8xf32>, vector<8x128xf32>, vector<8x128xf32> -> vector<8x128xf32>
      %20 = arith.negf %19 : vector<8x128xf32>
      %21 = math.exp %20 : vector<8x128xf32>
      %cst_19 = arith.constant 1.000000e+00 : f32
      %22 = vector.broadcast %cst_19 : f32 to vector<8x128xf32>
      %23 = arith.addf %22, %21 : vector<8x128xf32>
      %24 = arith.divf %22, %23 : vector<8x128xf32>
      %25 = arith.mulf %13, %24 : vector<8x128xf32>
      %c0_20 = arith.constant 0 : index
      %c0_21 = arith.constant 0 : index
      %26 = vector.load %arg5[%c0_20, %c0_21] : memref<128x128xf32, #tpu.memory_space<vmem>>, vector<128x128xf32>
      %cst_22 = arith.constant dense<0.000000e+00> : vector<8x128xf32>
      %27 = tpu.matmul %25, %26, %cst_22 {dimension_numbers = #tpu.dot_dimension_numbers<[1], [0], [0], [1], [0, 0, 1, 1], [], []>} : vector<8x128xf32>, vector<128x128xf32>, vector<8x128xf32> -> vector<8x128xf32>
      %c0_23 = arith.constant 0 : index
      %c0_24 = arith.constant 0 : index
      %28 = vector.load %arg6[%c0_23, %c0_24] : memref<1x128xf32, #tpu.memory_space<vmem>>, vector<1x128xf32>
      %29 = vector.broadcast %28 : vector<1x128xf32> to vector<8x128xf32>
      %30 = arith.addf %27, %29 : vector<8x128xf32>
      %c0_25 = arith.constant 0 : index
      %c0_26 = arith.constant 0 : index
      %31 = vector.load %arg7[%c0_25, %c0_26] : memref<8x128xf32, #tpu.memory_space<vmem>>, vector<8x128xf32>
      tpu.vector_store %arg7[%c0_25, %c0_26], %30 {strides = array<i32>} : memref<8x128xf32, #tpu.memory_space<vmem>>, vector<8x128xf32>,
    } else {
    }
    return
  }
  func.func @transform_0(%arg0: i32, %arg1: i32) -> (i32, i32, i32) {
    %c0_i32 = arith.constant 0 : i32
    %c0_i32_0 = arith.constant 0 : i32
    return %arg0, %c0_i32, %arg1 : i32, i32, i32
  }
  func.func @transform_1(%arg0: i32, %arg1: i32) -> (i32, i32) {
    %c0_i32 = arith.constant 0 : i32
    %c0_i32_0 = arith.constant 0 : i32
    %c0_i32_1 = arith.constant 0 : i32
    return %c0_i32, %c0_i32_0 : i32, i32
  }
  func.func @transform_2(%arg0: i32, %arg1: i32) -> (i32, i32) {
    %c0_i32 = arith.constant 0 : i32
    %c0_i32_0 = arith.constant 0 : i32
    %c0_i32_1 = arith.constant 0 : i32
    return %c0_i32, %c0_i32_0 : i32, i32
  }
  func.func @transform_3(%arg0: i32, %arg1: i32) -> (i32, i32) {
    %c0_i32 = arith.constant 0 : i32
    %c0_i32_0 = arith.constant 0 : i32
    %c0_i32_1 = arith.constant 0 : i32
    return %c0_i32, %c0_i32_0 : i32, i32
  }
  func.func @transform_4(%arg0: i32, %arg1: i32) -> (i32, i32) {
    %c0_i32 = arith.constant 0 : i32
    %c0_i32_0 = arith.constant 0 : i32
    %c0_i32_1 = arith.constant 0 : i32
    return %c0_i32, %c0_i32_0 : i32, i32
  }
  func.func @transform_5(%arg0: i32, %arg1: i32) -> (i32, i32) {
    %c0_i32 = arith.constant 0 : i32
    %c0_i32_0 = arith.constant 0 : i32
    return %arg0, %c0_i32 : i32, i32
  }
}

</mosaic_0001>

<bundles_post_ra>
// kernel: coco_classifier_forward.1
= control target key start
LH: loop header
LB: loop body
LE: loop exit
PB: predicated region body
PF: predicated region fallthrough
CT: control target
= control target key end

     0   :  { %vm799_vm0 = vcmask 130112   ;;  %vm803_vm1 = vcmask 195712   ;;  %vm807_vm2 = vcmask 261312   ;;  %vm811_vm3 = vcmask 326912   ;;  %s2564_s0 = inlined_call_operand.vmem [shape: f32[8,128,256], index: 0, kind: input, shape index: {}]   ;;  %s2565_s1 = inlined_call_operand.vmem [shape: f32[128,8], index: 1, kind: input, shape index: {}]   ;;  %s2566_s2 = inlined_call_operand.vmem [shape: f32[8,128], index: 2, kind: input, shape index: {}]   ;;  %s2567_s4 = inlined_call_operand.vmem [shape: f32[1,128], index: 4, kind: input, shape index: {}]   ;;  %s2568_s3 = inlined_call_operand.vmem [shape: f32[128,128], index: 3, kind: input, shape index: {}]   ;;  %s2569_s5 = inlined_call_operand.vmem [shape: f32[8,128], index: 5, kind: output, shape index: {}]  }
   0x1   :  { %v58_v0 = vld [vmem:[%s2564_s0 + $0x100] sm:$0xff]  ;;  %v59_v1 = vld [vmem:[%s2564_s0 + $0x108] sm:$0xff]  ;;  %v60_v9 = vld [vmem:[%s2564_s0 + $0x110] sm:$0xff]  ;;  %vm815_vm4 = vcmask 392512   ;;  %vm819_vm5 = vcmask 458112   ;;  %vm823_vm6 = vcmask 523712  }
   0x2   :  { %v30_v2 = vld [vmem:[%s2564_s0 + $0x20] sm:$0xff]  ;;  %v330_v3 = vadd.f32 %v59_v1, %v58_v0  ;;  %v31_v4 = vld [vmem:[%s2564_s0 + $0x28] sm:$0xff]  ;;  %v61_v10 = vld [vmem:[%s2564_s0 + $0x118] sm:$0xff]  ;;  %vm827_vm7 = vcmask 589312   ;;  %vm831_vm8 = vcmask 654912   ;;  %vm835_vm9 = vcmask 720512  }
   0x3   :  { %v26_v5 = vld [vmem:[%s2564_s0] sm:$0xff]  ;;  %v27_v6 = vld [vmem:[%s2564_s0 + $0x8] sm:$0xff]  ;;  %v288_v7 = vadd.f32 %v31_v4, %v30_v2  ;;  %v28_v13 = vld [vmem:[%s2564_s0 + $0x10] sm:$0xff]  ;;  %v333_v15 = vadd.f32 %v61_v10, %v60_v9  ;;  %vm839_vm10 = vcmask 786112   ;;  %vm843_vm11 = vcmask 851712  }
   0x4   :  { %v282_v8 = vadd.f32 %v27_v6, %v26_v5  ;;  %331 = vadd.xlane.f32.xlu1 %v330_v3  ;;  %v62_v11 = vld [vmem:[%s2564_s0 + $0x120] sm:$0xff]  ;;  %v63_v12 = vld [vmem:[%s2564_s0 + $0x128] sm:$0xff]  ;;  %v29_v14 = vld [vmem:[%s2564_s0 + $0x18] sm:$0xff]  ;;  %vm847_vm12 = vcmask 917312   ;;  %vm851_vm13 = vcmask 982912   ;;  %vm855_vm14 = vcmask 1048512  }
   0x5   :  { %289 = vadd.xlane.f32.xlu2 %v288_v7  ;;  %v336_v16 = vadd.f32 %v63_v12, %v62_v11  ;;  %v285_v17 = vadd.f32 %v29_v14, %v28_v13  ;;  %v92_v18 = vld [vmem:[%s2564_s0 + $0x210] sm:$0xff]  ;;  %v93_v19 = vld [vmem:[%s2564_s0 + $0x218] sm:$0xff]  ;;  %v90_v22 = vld [vmem:[%s2564_s0 + $0x200] sm:$0xff]  ;;  %vm1074_vm15 = vcmask 1041409  }
   0x6   :  { %283 = vadd.xlane.f32.xlu0 %v282_v8  ;;  %v32_v20 = vld [vmem:[%s2564_s0 + $0x30] sm:$0xff]  ;;  %v33_v21 = vld [vmem:[%s2564_s0 + $0x38] sm:$0xff]  ;;  %v91_v23 = vld [vmem:[%s2564_s0 + $0x208] sm:$0xff]  ;;  %v381_v24 = vadd.f32 %v93_v19, %v92_v18 }
   0x7   :  { %v291_v25 = vadd.f32 %v33_v21, %v32_v20  ;;  %v378_v26 = vadd.f32 %v91_v23, %v90_v22  ;;  %v94_v27 = vld [vmem:[%s2564_s0 + $0x220] sm:$0xff]  ;;  %v95_v28 = vld [vmem:[%s2564_s0 + $0x228] sm:$0xff]  ;;  %v64_v31 = vld [vmem:[%s2564_s0 + $0x130] sm:$0xff] }
   0x8   :  { %v122_v29 = vld [vmem:[%s2564_s0 + $0x300] sm:$0xff]  ;;  %v123_v30 = vld [vmem:[%s2564_s0 + $0x308] sm:$0xff]  ;;  %v65_v32 = vld [vmem:[%s2564_s0 + $0x138] sm:$0xff]  ;;  %v384_v33 = vadd.f32 %v95_v28, %v94_v27 }
   0x9   :  { %v426_v34 = vadd.f32 %v123_v30, %v122_v29  ;;  %v339_v35 = vadd.f32 %v65_v32, %v64_v31  ;;  %v34_v36 = vld [vmem:[%s2564_s0 + $0x40] sm:$0xff]  ;;  %v35_v37 = vld [vmem:[%s2564_s0 + $0x48] sm:$0xff]  ;;  %v124_v40 = vld [vmem:[%s2564_s0 + $0x310] sm:$0xff] }
   0xa   :  { %v66_v38 = vld [vmem:[%s2564_s0 + $0x140] sm:$0xff]  ;;  %v67_v39 = vld [vmem:[%s2564_s0 + $0x148] sm:$0xff]  ;;  %v125_v41 = vld [vmem:[%s2564_s0 + $0x318] sm:$0xff]  ;;  %v294_v42 = vadd.f32 %v35_v37, %v34_v36 }
   0xb   :  { %v342_v43 = vadd.f32 %v67_v39, %v66_v38  ;;  %v429_v44 = vadd.f32 %v125_v41, %v124_v40  ;;  %v126_v45 = vld [vmem:[%s2564_s0 + $0x320] sm:$0xff]  ;;  %v127_v46 = vld [vmem:[%s2564_s0 + $0x328] sm:$0xff]  ;;  %v96_v49 = vld [vmem:[%s2564_s0 + $0x230] sm:$0xff] }
   0xc   :  { %334 = vadd.xlane.f32.xlu1 %v333_v15  ;;  %v154_v47 = vld [vmem:[%s2564_s0 + $0x400] sm:$0xff]  ;;  %v155_v48 = vld [vmem:[%s2564_s0 + $0x408] sm:$0xff]  ;;  %v97_v50 = vld [vmem:[%s2564_s0 + $0x238] sm:$0xff]  ;;  %v432_v51 = vadd.f32 %v127_v46, %v126_v45 }
   0xd   :  { %337 = vadd.xlane.f32.xlu2 %v336_v16  ;;  %v474_v52 = vadd.f32 %v155_v48, %v154_v47  ;;  %v387_v53 = vadd.f32 %v97_v50, %v96_v49  ;;  %v36_v54 = vld [vmem:[%s2564_s0 + $0x50] sm:$0xff]  ;;  %v37_v55 = vld [vmem:[%s2564_s0 + $0x58] sm:$0xff]  ;;  %v158_v1 = vld [vmem:[%s2564_s0 + $0x420] sm:$0xff] }
   0xe   :  { %286 = vadd.xlane.f32.xlu0 %v285_v17  ;;  %v68_v56 = vld [vmem:[%s2564_s0 + $0x150] sm:$0xff]  ;;  %v69_v57 = vld [vmem:[%s2564_s0 + $0x158] sm:$0xff]  ;;  %v297_v60 = vadd.f32 %v37_v55, %v36_v54  ;;  %v159_v2 = vld [vmem:[%s2564_s0 + $0x428] sm:$0xff] }
   0xf   :  { %v156_v58 = vld [vmem:[%s2564_s0 + $0x410] sm:$0xff]  ;;  %v157_v59 = vld [vmem:[%s2564_s0 + $0x418] sm:$0xff]  ;;  %v345_v61 = vadd.f32 %v69_v57, %v68_v56  ;;  %v98_v3 = vld [vmem:[%s2564_s0 + $0x240] sm:$0xff]  ;;  %v480_v6 = vadd.f32 %v159_v2, %v158_v1 }
  0x10   :  { %v477_v62 = vadd.f32 %v157_v59, %v156_v58  ;;  %v128_v63 = vld [vmem:[%s2564_s0 + $0x330] sm:$0xff]  ;;  %v129_v0 = vld [vmem:[%s2564_s0 + $0x338] sm:$0xff]  ;;  %v99_v4 = vld [vmem:[%s2564_s0 + $0x248] sm:$0xff] }
  0x11   :  { %v435_v5 = vadd.f32 %v129_v0, %v128_v63  ;;  %v390_v7 = vadd.f32 %v99_v4, %v98_v3  ;;  %v188_v8 = vld [vmem:[%s2564_s0 + $0x510] sm:$0xff]  ;;  %v189_v9 = vld [vmem:[%s2564_s0 + $0x518] sm:$0xff]  ;;  %v38_v10 = vld [vmem:[%s2564_s0 + $0x60] sm:$0xff] }
  0x12   :  { %v39_v11 = vld [vmem:[%s2564_s0 + $0x68] sm:$0xff]  ;;  %v186_v12 = vld [vmem:[%s2564_s0 + $0x500] sm:$0xff]  ;;  %v525_v14 = vadd.f32 %v189_v9, %v188_v8  ;;  %v100_v17 = vld [vmem:[%s2564_s0 + $0x250] sm:$0xff] }
  0x13   :  { %v187_v13 = vld [vmem:[%s2564_s0 + $0x508] sm:$0xff]  ;;  %v300_v15 = vadd.f32 %v39_v11, %v38_v10  ;;  %v101_v18 = vld [vmem:[%s2564_s0 + $0x258] sm:$0xff]  ;;  %v130_v19 = vld [vmem:[%s2564_s0 + $0x340] sm:$0xff]  ;;  %v794_v10 = vlaneseq }
  0x14   :  { %382 = vadd.xlane.f32.xlu1 %v381_v24  ;;  %v522_v16 = vadd.f32 %v187_v13, %v186_v12  ;;  %v131_v20 = vld [vmem:[%s2564_s0 + $0x348] sm:$0xff]  ;;  %v70_v21 = vld [vmem:[%s2564_s0 + $0x160] sm:$0xff]  ;;  %v393_v23 = vadd.f32 %v101_v18, %v100_v17  ;;  %v160_v30 = vld [vmem:[%s2564_s0 + $0x430] sm:$0xff] }
  0x15   :  { %292 = vadd.xlane.f32.xlu2 %v291_v25  ;;  %v71_v22 = vld [vmem:[%s2564_s0 + $0x168] sm:$0xff]  ;;  %v438_v24 = vadd.f32 %v131_v20, %v130_v19  ;;  %v218_v28 = vld [vmem:[%s2564_s0 + $0x600] sm:$0xff]  ;;  %v161_v31 = vld [vmem:[%s2564_s0 + $0x438] sm:$0xff]  ;;  %v1548_v20 = vand.u32 127, %v794_v10 }
  0x16   :  { %379 = vadd.xlane.f32.xlu0 %v378_v26  ;;  %v348_v25 = vadd.f32 %v71_v22, %v70_v21  ;;  %v190_v26 = vld [vmem:[%s2564_s0 + $0x520] sm:$0xff]  ;;  %v191_v27 = vld [vmem:[%s2564_s0 + $0x528] sm:$0xff]  ;;  %v41_v36 = vld [vmem:[%s2564_s0 + $0x78] sm:$0xff] }
  0x17   :  { %v219_v29 = vld [vmem:[%s2564_s0 + $0x608] sm:$0xff]  ;;  %v528_v32 = vadd.f32 %v191_v27, %v190_v26  ;;  %v72_v37 = vld [vmem:[%s2564_s0 + $0x170] sm:$0xff]  ;;  %v73_v38 = vld [vmem:[%s2564_s0 + $0x178] sm:$0xff]  ;;  %v1551_v21 = vadd.s32 4294967280, %v1548_v20  ;;  %v1554_v22 = vadd.s32 4294967288, %v1548_v20 }
  0x18   :  { %v220_v39 = vld [vmem:[%s2564_s0 + $0x610] sm:$0xff]  ;;  %v221_v40 = vld [vmem:[%s2564_s0 + $0x618] sm:$0xff]  ;;  %v162_v46 = vld [vmem:[%s2564_s0 + $0x440] sm:$0xff] }
  0x19   :  { %v133_v45 = vld [vmem:[%s2564_s0 + $0x358] sm:$0xff]  ;;  %v163_v47 = vld [vmem:[%s2564_s0 + $0x448] sm:$0xff]  ;;  %v102_v48 = vld [vmem:[%s2564_s0 + $0x260] sm:$0xff] }
  0x1a   :  { %v103_v49 = vld [vmem:[%s2564_s0 + $0x268] sm:$0xff]  ;;  %v250_v55 = vld [vmem:[%s2564_s0 + $0x700] sm:$0xff]  ;;  %v192_v57 = vld [vmem:[%s2564_s0 + $0x530] sm:$0xff] }
  0x1b   :  { %v223_v54 = vld [vmem:[%s2564_s0 + $0x628] sm:$0xff]  ;;  %v193_v58 = vld [vmem:[%s2564_s0 + $0x538] sm:$0xff]  ;;  %v74_v0 = vld [vmem:[%s2564_s0 + $0x180] sm:$0xff] }
  0x1c   :  { %385 = vadd.xlane.f32.xlu1 %v384_v33  ;;  %v570_v33 = vadd.f32 %v219_v29, %v218_v28  ;;  %v251_v56 = vld [vmem:[%s2564_s0 + $0x708] sm:$0xff]  ;;  %v252_v2 = vld [vmem:[%s2564_s0 + $0x710] sm:$0xff]  ;;  %v253_v3 = vld [vmem:[%s2564_s0 + $0x718] sm:$0xff] }
  0x1d   :  { %427 = vadd.xlane.f32.xlu2 %v426_v34  ;;  %v483_v34 = vadd.f32 %v161_v31, %v160_v30  ;;  %v43_v63 = vld [vmem:[%s2564_s0 + $0x88] sm:$0xff]  ;;  %v164_v9 = vld [vmem:[%s2564_s0 + $0x450] sm:$0xff]  ;;  %v165_v11 = vld [vmem:[%s2564_s0 + $0x458] sm:$0xff] }
  0x1e   :  { %340 = vadd.xlane.f32.xlu0 %v339_v35  ;;  %v40_v35 = vld [vmem:[%s2564_s0 + $0x70] sm:$0xff]  ;;  %v75_v1 = vld [vmem:[%s2564_s0 + $0x188] sm:$0xff]  ;;  %v105_v13 = vld [vmem:[%s2564_s0 + $0x278] sm:$0xff]  ;;  %v489_v18 = vadd.f32 %v165_v11, %v164_v9 }
  0x1f   :  { %v303_v41 = vadd.f32 %v41_v36, %v40_v35  ;;  %v135_v8 = vld [vmem:[%s2564_s0 + $0x368] sm:$0xff]  ;;  %v104_v12 = vld [vmem:[%s2564_s0 + $0x270] sm:$0xff]  ;;  %v194_v27 = vld [vmem:[%s2564_s0 + $0x540] sm:$0xff] }
  0x20   :  { %v399_v19 = vadd.f32 %v105_v13, %v104_v12  ;;  %v255_v26 = vld [vmem:[%s2564_s0 + $0x728] sm:$0xff] }
  0x21   :  { %v195_v28 = vld [vmem:[%s2564_s0 + $0x548] sm:$0xff] }
  0x24   :  { %295 = vadd.xlane.f32.xlu1 %v294_v42  ;;  %v351_v42 = vadd.f32 %v73_v38, %v72_v37 }
  0x25   :  { %343 = vadd.xlane.f32.xlu2 %v342_v43  ;;  %v573_v43 = vadd.f32 %v221_v40, %v220_v39  ;;  %v534_v40 = vadd.f32 %v195_v28, %v194_v27 }
  0x26   :  { %430 = vadd.xlane.f32.xlu0 %v429_v44  ;;  %v132_v44 = vld [vmem:[%s2564_s0 + $0x350] sm:$0xff] }
  0x27   :  { %v441_v50 = vadd.f32 %v133_v45, %v132_v44  ;;  %v1585_v45 = vadd.s32 4294967272, %v1548_v20 }
  0x2c   :  { %433 = vadd.xlane.f32.xlu1 %v432_v51  ;;  %v486_v51 = vadd.f32 %v163_v47, %v162_v46  ;;  %v76_v46 = vld [vmem:[%s2564_s0 + $0x190] sm:$0xff]  ;;  %v77_v47 = vld [vmem:[%s2564_s0 + $0x198] sm:$0xff] }
  0x2d   :  { %475 = vadd.xlane.f32.xlu2 %v474_v52  ;;  %v396_v52 = vadd.f32 %v103_v49, %v102_v48  ;;  %v106_v48 = vld [vmem:[%s2564_s0 + $0x280] sm:$0xff]  ;;  %v107_v49 = vld [vmem:[%s2564_s0 + $0x288] sm:$0xff] }
  0x2e   :  { %388 = vadd.xlane.f32.xlu0 %v387_v53  ;;  %v222_v53 = vld [vmem:[%s2564_s0 + $0x620] sm:$0xff] }
  0x2f   :  { %v576_v59 = vadd.f32 %v223_v54, %v222_v53 }
  0x34   :  { %298 = vadd.xlane.f32.xlu1 %v297_v60  ;;  %v618_v60 = vadd.f32 %v251_v56, %v250_v55  ;;  %v357_v56 = vadd.f32 %v77_v47, %v76_v46 }
  0x35   :  { %346 = vadd.xlane.f32.xlu2 %v345_v61  ;;  %v531_v61 = vadd.f32 %v193_v58, %v192_v57 }
  0x36   :  { %478 = vadd.xlane.f32.xlu0 %v477_v62  ;;  %v42_v62 = vld [vmem:[%s2564_s0 + $0x80] sm:$0xff] }
  0x37   :  { %v306_v4 = vadd.f32 %v43_v63, %v42_v62  ;;  %v166_v63 = vld [vmem:[%s2564_s0 + $0x460] sm:$0xff] }
  0x3c   :  { %436 = vadd.xlane.f32.xlu1 %v435_v5  ;;  %v354_v5 = vadd.f32 %v75_v1, %v74_v0  ;;  %v167_v0 = vld [vmem:[%s2564_s0 + $0x468] sm:$0xff]  ;;  %v196_v1 = vld [vmem:[%s2564_s0 + $0x550] sm:$0xff] }
  0x3d   :  { %481 = vadd.xlane.f32.xlu2 %v480_v6  ;;  %v621_v6 = vadd.f32 %v253_v3, %v252_v2  ;;  %v197_v2 = vld [vmem:[%s2564_s0 + $0x558] sm:$0xff]  ;;  %v136_v3 = vld [vmem:[%s2564_s0 + $0x370] sm:$0xff]  ;;  %v492_v9 = vadd.f32 %v167_v0, %v166_v63 }
  0x3e   :  { %391 = vadd.xlane.f32.xlu0 %v390_v7  ;;  %v134_v7 = vld [vmem:[%s2564_s0 + $0x360] sm:$0xff]  ;;  %v537_v11 = vadd.f32 %v197_v2, %v196_v1 }
  0x3f   :  { %v444_v17 = vadd.f32 %v135_v8, %v134_v7 }
  0x44   :  { %526 = vadd.xlane.f32.xlu1 %v525_v14 }
  0x45   :  { %301 = vadd.xlane.f32.xlu2 %v300_v15 }
  0x46   :  { %523 = vadd.xlane.f32.xlu0 %v522_v16 }
  0x4c   :  { %394 = vadd.xlane.f32.xlu1 %v393_v23  ;;  %v224_v23 = vld [vmem:[%s2564_s0 + $0x630] sm:$0xff] }
  0x4d   :  { %439 = vadd.xlane.f32.xlu2 %v438_v24  ;;  %v225_v24 = vld [vmem:[%s2564_s0 + $0x638] sm:$0xff] }
  0x4e   :  { %349 = vadd.xlane.f32.xlu0 %v348_v25  ;;  %v254_v25 = vld [vmem:[%s2564_s0 + $0x720] sm:$0xff]  ;;  %v579_v30 = vadd.f32 %v225_v24, %v224_v23  ;;  %v227_v24 = vld [vmem:[%s2564_s0 + $0x648] sm:$0xff] }
  0x4f   :  { %v624_v36 = vadd.f32 %v255_v26, %v254_v25  ;;  %v226_v23 = vld [vmem:[%s2564_s0 + $0x640] sm:$0xff] }
  0x54   :  { %529 = vadd.xlane.f32.xlu1 %v528_v32 }
  0x55   :  { %571 = vadd.xlane.f32.xlu2 %v570_v33 }
  0x56   :  { %484 = vadd.xlane.f32.xlu0 %v483_v34 }
  0x5c   :  { %304 = vadd.xlane.f32.xlu1 %v303_v41 }
  0x5d   :  { %352 = vadd.xlane.f32.xlu2 %v351_v42 }
  0x5e   :  { %574 = vadd.xlane.f32.xlu0 %v573_v43 }
  0x64   :  { %442 = vadd.xlane.f32.xlu1 %v441_v50  ;;  %v44_v50 = vld [vmem:[%s2564_s0 + $0x90] sm:$0xff] }
  0x65   :  { %487 = vadd.xlane.f32.xlu2 %v486_v51  ;;  %v45_v51 = vld [vmem:[%s2564_s0 + $0x98] sm:$0xff] }
  0x66   :  { %397 = vadd.xlane.f32.xlu0 %v396_v52 }
  0x6c   :  { %577 = vadd.xlane.f32.xlu1 %v576_v59  ;;  %v402_v59 = vadd.f32 %v107_v49, %v106_v48 }
  0x6d   :  { %619 = vadd.xlane.f32.xlu2 %v618_v60  ;;  %v309_v60 = vadd.f32 %v45_v51, %v44_v50 }
  0x6e   :  { %532 = vadd.xlane.f32.xlu0 %v531_v61 }
  0x74   :  { %307 = vadd.xlane.f32.xlu1 %v306_v4  ;;  %v137_v4 = vld [vmem:[%s2564_s0 + $0x378] sm:$0xff] }
  0x75   :  { %355 = vadd.xlane.f32.xlu2 %v354_v5  ;;  %v447_v12 = vadd.f32 %v137_v4, %v136_v3 }
  0x76   :  { %622 = vadd.xlane.f32.xlu0 %v621_v6 }
  0x77   :  { %v332_v14 = vpop.xlane.xlu1 %331 }
  0x78   :  { %v290_v15 = vpop.xlane.xlu2 %289  ;;  %v857_v31 = vperm.slane %v332_v14, %v1548_v20 }
  0x79   :  { %v284_v16 = vpop.xlane.xlu0 %283  ;;  %v802_v32 = vperm.slane %v290_v15, %v1551_v21  ;;  %v1633_v15 = vadd.s32 4294967264, %v1548_v20 }
  0x7a   :  { %v796_v37 = vperm.slane %v284_v16, %v1548_v20  ;;  %v256_v16 = vld [vmem:[%s2564_s0 + $0x730] sm:$0xff] }
  0x7c   :  { %445 = vadd.xlane.f32.xlu1 %v444_v17  ;;  %v257_v17 = vld [vmem:[%s2564_s0 + $0x738] sm:$0xff] }
  0x7d   :  { %490 = vadd.xlane.f32.xlu2 %v489_v18  ;;  %v46_v18 = vld [vmem:[%s2564_s0 + $0xa0] sm:$0xff] }
  0x7e   :  { %400 = vadd.xlane.f32.xlu0 %v399_v19  ;;  %v47_v19 = vld [vmem:[%s2564_s0 + $0xa8] sm:$0xff] }
  0x7f   :  { %v335_v29 = vpop.xlane.xlu1 %334 }
  0x80   :  { %v858_v33 = vperm.slane %v335_v29, %v1554_v22  ;;  %v338_v34 = vpop.xlane.xlu2 %337 }
  0x81   :  { %v287_v35 = vpop.xlane.xlu0 %286  ;;  %v860_v38 = vperm.slane %v338_v34, %v1551_v21  ;;  %v582_v34 = vadd.f32 %v227_v24, %v226_v23 }
  0x82   :  { %v798_v39 = vperm.slane %v287_v35, %v1554_v22  ;;  %v859_v41 = vsel %vm799_vm0, %v858_v33, %v857_v31  ;;  %v312_v33 = vadd.f32 %v47_v19, %v46_v18 }
  0x83   :  { %v861_v42 = vsel %vm803_vm1, %v860_v38, %v859_v41  ;;  %v108_v38 = vld [vmem:[%s2564_s0 + $0x290] sm:$0xff]  ;;  %v139_v41 = vld [vmem:[%s2564_s0 + $0x388] sm:$0xff] }
  0x84   :  { %v800_v43 = vsel %vm799_vm0, %v798_v39, %v796_v37  ;;  %580 = vadd.xlane.f32.xlu1 %v579_v30  ;;  %v627_v30 = vadd.f32 %v257_v17, %v256_v16  ;;  %v109_v39 = vld [vmem:[%s2564_s0 + $0x298] sm:$0xff]  ;;  %v258_v16 = vld [vmem:[%s2564_s0 + $0x740] sm:$0xff]  ;;  %v259_v17 = vld [vmem:[%s2564_s0 + $0x748] sm:$0xff] }
  0x85   :  { %v804_v44 = vsel %vm803_vm1, %v802_v32, %v800_v43  ;;  %625 = vadd.xlane.f32.xlu2 %v624_v36  ;;  %v79_v43 = vld [vmem:[%s2564_s0 + $0x1a8] sm:$0xff]  ;;  %v405_v49 = vadd.f32 %v109_v39, %v108_v38  ;;  %v110_v38 = vld [vmem:[%s2564_s0 + $0x2a0] sm:$0xff] }
  0x86   :  { %535 = vadd.xlane.f32.xlu0 %v534_v40  ;;  %v138_v40 = vld [vmem:[%s2564_s0 + $0x380] sm:$0xff]  ;;  %v111_v39 = vld [vmem:[%s2564_s0 + $0x2a8] sm:$0xff] }
  0x87   :  { %v383_v52 = vpop.xlane.xlu1 %382  ;;  %v450_v51 = vadd.f32 %v139_v41, %v138_v40 }
  0x88   :  { %v889_v53 = vperm.slane %v383_v52, %v1554_v22  ;;  %v293_v54 = vpop.xlane.xlu2 %292 }
  0x89   :  { %v380_v55 = vpop.xlane.xlu0 %379  ;;  %v806_v57 = vperm.slane %v293_v54, %v1585_v45 }
  0x8a   :  { %v888_v58 = vperm.slane %v380_v55, %v1548_v20  ;;  %v1683_v55 = vadd.s32 4294967256, %v1548_v20 }
  0x8b   :  { %v808_v61 = vsel %vm807_vm2, %v806_v57, %v804_v44  ;;  %v199_v57 = vld [vmem:[%s2564_s0 + $0x568] sm:$0xff] }
  0x8c   :  { %v890_v62 = vsel %vm799_vm0, %v889_v53, %v888_v58  ;;  %358 = vadd.xlane.f32.xlu1 %v357_v56  ;;  %v198_v56 = vld [vmem:[%s2564_s0 + $0x560] sm:$0xff]  ;;  %v228_v58 = vld [vmem:[%s2564_s0 + $0x650] sm:$0xff] }
  0x8d   :  { %403 = vadd.xlane.f32.xlu2 %v402_v59  ;;  %v229_v59 = vld [vmem:[%s2564_s0 + $0x658] sm:$0xff]  ;;  %v540_v3 = vadd.f32 %v199_v57, %v198_v56  ;;  %v200_v57 = vld [vmem:[%s2564_s0 + $0x570] sm:$0xff] }
  0x8e   :  { %310 = vadd.xlane.f32.xlu0 %v309_v60  ;;  %v168_v60 = vld [vmem:[%s2564_s0 + $0x470] sm:$0xff]  ;;  %v261_v56 = vld [vmem:[%s2564_s0 + $0x758] sm:$0xff] }
  0x8f   :  { %v386_v5 = vpop.xlane.xlu1 %385 }
  0x90   :  { %v891_v6 = vperm.slane %v386_v5, %v1551_v21  ;;  %v428_v7 = vpop.xlane.xlu2 %427 }
  0x91   :  { %v341_v8 = vpop.xlane.xlu0 %340  ;;  %v919_v25 = vperm.slane %v428_v7, %v1548_v20 }
  0x92   :  { %v862_v10 = vperm.slane %v341_v8, %v1585_v45  ;;  %v892_v13 = vsel %vm803_vm1, %v891_v6, %v890_v62  ;;  %v585_v6 = vadd.f32 %v229_v59, %v228_v58  ;;  %v201_v58 = vld [vmem:[%s2564_s0 + $0x578] sm:$0xff] }
  0x94   :  { %v863_v14 = vsel %vm807_vm2, %v862_v10, %v861_v42  ;;  %493 = vadd.xlane.f32.xlu1 %v492_v9  ;;  %v78_v42 = vld [vmem:[%s2564_s0 + $0x1a0] sm:$0xff] }
  0x95   :  { %538 = vadd.xlane.f32.xlu2 %v537_v11  ;;  %v360_v52 = vadd.f32 %v79_v43, %v78_v42  ;;  %v48_v11 = vld [vmem:[%s2564_s0 + $0xb0] sm:$0xff] }
  0x96   :  { %448 = vadd.xlane.f32.xlu0 %v447_v12  ;;  %v49_v12 = vld [vmem:[%s2564_s0 + $0xb8] sm:$0xff] }
  0x97   :  { %v296_v26 = vpop.xlane.xlu1 %295 }
  0x98   :  { %v810_v27 = vperm.slane %v296_v26, %v1633_v15  ;;  %v344_v28 = vpop.xlane.xlu2 %343 }
  0x99   :  { %v431_v29 = vpop.xlane.xlu0 %430  ;;  %v864_v31 = vperm.slane %v344_v28, %v1633_v15 }
  0x9a   :  { %v920_v32 = vperm.slane %v431_v29, %v1554_v22  ;;  %v812_v35 = vsel %vm811_vm3, %v810_v27, %v808_v61  ;;  %v169_v61 = vld [vmem:[%s2564_s0 + $0x478] sm:$0xff]  ;;  %v630_v29 = vadd.f32 %v259_v17, %v258_v16 }
  0x9b   :  { %v865_v36 = vsel %vm811_vm3, %v864_v31, %v863_v14  ;;  %v495_v7 = vadd.f32 %v169_v61, %v168_v60  ;;  %v81_v14 = vld [vmem:[%s2564_s0 + $0x1b8] sm:$0xff] }
  0x9c   :  { %v921_v37 = vsel %vm799_vm0, %v920_v32, %v919_v25  ;;  %628 = vadd.xlane.f32.xlu1 %v627_v30  ;;  %v315_v25 = vadd.f32 %v49_v12, %v48_v11  ;;  %v113_v11 = vld [vmem:[%s2564_s0 + $0x2b8] sm:$0xff]  ;;  %v51_v12 = vld [vmem:[%s2564_s0 + $0xc8] sm:$0xff] }
  0x9d   :  { %313 = vadd.xlane.f32.xlu2 %v312_v33  ;;  %v1739_v33 = vadd.s32 4294967248, %v1548_v20 }
  0x9e   :  { %583 = vadd.xlane.f32.xlu0 %v582_v34  ;;  %v140_v34 = vld [vmem:[%s2564_s0 + $0x390] sm:$0xff] }
  0x9f   :  { %v434_v44 = vpop.xlane.xlu1 %433 }
  0xa0   :  { %v922_v46 = vperm.slane %v434_v44, %v1551_v21  ;;  %v476_v47 = vpop.xlane.xlu2 %475 }
  0xa1   :  { %v389_v48 = vpop.xlane.xlu0 %388  ;;  %v950_v62 = vperm.slane %v476_v47, %v1548_v20 }
  0xa2   :  { %v893_v50 = vperm.slane %v389_v48, %v1585_v45  ;;  %v923_v53 = vsel %vm803_vm1, %v922_v46, %v921_v37  ;;  %v171_v37 = vld [vmem:[%s2564_s0 + $0x488] sm:$0xff] }
  0xa4   :  { %v894_v54 = vsel %vm807_vm2, %v893_v50, %v892_v13  ;;  %406 = vadd.xlane.f32.xlu1 %v405_v49  ;;  %v80_v13 = vld [vmem:[%s2564_s0 + $0x1b0] sm:$0xff]  ;;  %v408_v49 = vadd.f32 %v111_v39, %v110_v38 }
  0xa5   :  { %451 = vadd.xlane.f32.xlu2 %v450_v51  ;;  %v363_v28 = vadd.f32 %v81_v14, %v80_v13 }
  0xa6   :  { %361 = vadd.xlane.f32.xlu0 %v360_v52  ;;  %v230_v52 = vld [vmem:[%s2564_s0 + $0x660] sm:$0xff] }
  0xa7   :  { %v299_v63 = vpop.xlane.xlu1 %298 }
  0xa8   :  { %v814_v0 = vperm.slane %v299_v63, %v1683_v55  ;;  %v347_v1 = vpop.xlane.xlu2 %346 }
  0xa9   :  { %v479_v2 = vpop.xlane.xlu0 %478  ;;  %v866_v4 = vperm.slane %v347_v1, %v1683_v55 }
  0xaa   :  { %v951_v5 = vperm.slane %v479_v2, %v1554_v22  ;;  %v816_v8 = vsel %vm815_vm4, %v814_v0, %v812_v35  ;;  %v141_v35 = vld [vmem:[%s2564_s0 + $0x398] sm:$0xff] }
  0xab   :  { %v1709_v9 = vsel %vm815_vm4, %v866_v4, %v865_v36  ;;  %v170_v36 = vld [vmem:[%s2564_s0 + $0x480] sm:$0xff]  ;;  %v453_v44 = vadd.f32 %v141_v35, %v140_v34  ;;  %v143_v34 = vld [vmem:[%s2564_s0 + $0x3a8] sm:$0xff] }
  0xac   :  { %v952_v10 = vsel %vm799_vm0, %v951_v5, %v950_v62  ;;  %541 = vadd.xlane.f32.xlu1 %v540_v3  ;;  %v498_v48 = vadd.f32 %v171_v37, %v170_v36  ;;  %v543_v3 = vadd.f32 %v201_v58, %v200_v57 }
  0xad   :  { %586 = vadd.xlane.f32.xlu2 %v585_v6 }
  0xae   :  { %496 = vadd.xlane.f32.xlu0 %v495_v7  ;;  %v82_v7 = vld [vmem:[%s2564_s0 + $0x1c0] sm:$0xff] }
  0xaf   :  { %v437_v18 = vpop.xlane.xlu1 %436 }
  0xb0   :  { %v924_v19 = vperm.slane %v437_v18, %v1585_v45  ;;  %v482_v23 = vpop.xlane.xlu2 %481 }
  0xb1   :  { %v392_v24 = vpop.xlane.xlu0 %391  ;;  %v953_v26 = vperm.slane %v482_v23, %v1551_v21 }
  0xb2   :  { %v895_v27 = vperm.slane %v392_v24, %v1633_v15  ;;  %v925_v30 = vsel %vm807_vm2, %v924_v19, %v923_v53  ;;  %v231_v53 = vld [vmem:[%s2564_s0 + $0x668] sm:$0xff] }
  0xb3   :  { %v1735_v31 = vsel %vm803_vm1, %v953_v26, %v952_v10  ;;  %v588_v63 = vadd.f32 %v231_v53, %v230_v52  ;;  %v112_v10 = vld [vmem:[%s2564_s0 + $0x2b0] sm:$0xff]  ;;  %v53_v52 = vld [vmem:[%s2564_s0 + $0xd8] sm:$0xff] }
  0xb4   :  { %v896_v32 = vsel %vm811_vm3, %v895_v27, %v894_v54  ;;  %316 = vadd.xlane.f32.xlu1 %v315_v25  ;;  %v260_v54 = vld [vmem:[%s2564_s0 + $0x750] sm:$0xff]  ;;  %v411_v23 = vadd.f32 %v113_v11, %v112_v10  ;;  %v1821_v27 = vadd.s32 4294967240, %v1548_v20  ;;  %v85_v10 = vld [vmem:[%s2564_s0 + $0x1d8] sm:$0xff] }
  0xb5   :  { %364 = vadd.xlane.f32.xlu2 %v363_v28  ;;  %v633_v2 = vadd.f32 %v261_v56, %v260_v54  ;;  %v172_v28 = vld [vmem:[%s2564_s0 + $0x490] sm:$0xff]  ;;  %v233_v54 = vld [vmem:[%s2564_s0 + $0x678] sm:$0xff] }
  0xb6   :  { %631 = vadd.xlane.f32.xlu0 %v630_v29  ;;  %v173_v29 = vld [vmem:[%s2564_s0 + $0x498] sm:$0xff]  ;;  %v232_v53 = vld [vmem:[%s2564_s0 + $0x670] sm:$0xff] }
  0xb7   :  { %v527_v40 = vpop.xlane.xlu1 %526 }
  0xb8   :  { %v982_v41 = vperm.slane %v527_v40, %v1554_v22  ;;  %v302_v42 = vpop.xlane.xlu2 %301  ;;  %v501_v40 = vadd.f32 %v173_v29, %v172_v28  ;;  %v205_v28 = vld [vmem:[%s2564_s0 + $0x598] sm:$0xff]  ;;  %v234_v29 = vld [vmem:[%s2564_s0 + $0x680] sm:$0xff] }
  0xb9   :  { %v524_v43 = vpop.xlane.xlu0 %523  ;;  %v818_v46 = vperm.slane %v302_v42, %v1739_v33 }
  0xba   :  { %v981_v47 = vperm.slane %v524_v43, %v1548_v20 }
  0xbb   :  { %v1763_v50 = vsel %vm819_vm5, %v818_v46, %v816_v8  ;;  %v83_v8 = vld [vmem:[%s2564_s0 + $0x1c8] sm:$0xff] }
  0xbc   :  { %v983_v51 = vsel %vm799_vm0, %v982_v41, %v981_v47  ;;  %454 = vadd.xlane.f32.xlu1 %v453_v44  ;;  %v366_v18 = vadd.f32 %v83_v8, %v82_v7  ;;  %v115_v7 = vld [vmem:[%s2564_s0 + $0x2c8] sm:$0xff]  ;;  %v84_v8 = vld [vmem:[%s2564_s0 + $0x1d0] sm:$0xff] }
  0xbd   :  { %499 = vadd.xlane.f32.xlu2 %v498_v48 }
  0xbe   :  { %409 = vadd.xlane.f32.xlu0 %v408_v49  ;;  %v262_v49 = vld [vmem:[%s2564_s0 + $0x760] sm:$0xff] }
  0xbf   :  { %v395_v59 = vpop.xlane.xlu1 %394 }
  0xc0   :  { %v897_v60 = vperm.slane %v395_v59, %v1683_v55  ;;  %v440_v61 = vpop.xlane.xlu2 %439 }
  0xc1   :  { %v350_v62 = vpop.xlane.xlu0 %349  ;;  %v926_v0 = vperm.slane %v440_v61, %v1633_v15 }
  0xc2   :  { %v868_v1 = vperm.slane %v350_v62, %v1739_v33  ;;  %v1788_v4 = vsel %vm815_vm4, %v897_v60, %v896_v32  ;;  %v142_v32 = vld [vmem:[%s2564_s0 + $0x3a0] sm:$0xff] }
  0xc3   :  { %v1791_v5 = vsel %vm811_vm3, %v926_v0, %v925_v30  ;;  %v202_v30 = vld [vmem:[%s2564_s0 + $0x580] sm:$0xff]  ;;  %v456_v44 = vadd.f32 %v143_v34, %v142_v32  ;;  %v591_v0 = vadd.f32 %v233_v54, %v232_v53 }
  0xc4   :  { %v869_v6 = vsel %vm819_vm5, %v868_v1, %v1709_v9  ;;  %589 = vadd.xlane.f32.xlu1 %v588_v63  ;;  %v50_v9 = vld [vmem:[%s2564_s0 + $0xc0] sm:$0xff] }
  0xc5   :  { %634 = vadd.xlane.f32.xlu2 %v633_v2  ;;  %v318_v24 = vadd.f32 %v51_v12, %v50_v9 }
  0xc6   :  { %544 = vadd.xlane.f32.xlu0 %v543_v3 }
  0xc7   :  { %v530_v13 = vpop.xlane.xlu1 %529 }
  0xc8   :  { %v984_v14 = vperm.slane %v530_v13, %v1551_v21  ;;  %v572_v16 = vpop.xlane.xlu2 %571 }
  0xc9   :  { %v485_v17 = vpop.xlane.xlu0 %484  ;;  %v1012_v35 = vperm.slane %v572_v16, %v1548_v20 }
  0xca   :  { %v955_v19 = vperm.slane %v485_v17, %v1585_v45  ;;  %v1816_v25 = vsel %vm803_vm1, %v984_v14, %v983_v51  ;;  %v263_v51 = vld [vmem:[%s2564_s0 + $0x768] sm:$0xff] }
  0xcb   :  { %v636_v60 = vadd.f32 %v263_v51, %v262_v49  ;;  %v54_v49 = vld [vmem:[%s2564_s0 + $0xe0] sm:$0xff]  ;;  %v264_v51 = vld [vmem:[%s2564_s0 + $0x770] sm:$0xff] }
  0xcc   :  { %v956_v26 = vsel %vm807_vm2, %v955_v19, %v1735_v31  ;;  %367 = vadd.xlane.f32.xlu1 %v366_v18  ;;  %v203_v31 = vld [vmem:[%s2564_s0 + $0x588] sm:$0xff]  ;;  %v369_v18 = vadd.f32 %v85_v10, %v84_v8 }
  0xcd   :  { %412 = vadd.xlane.f32.xlu2 %v411_v23  ;;  %v546_v43 = vadd.f32 %v203_v31, %v202_v30  ;;  %v174_v30 = vld [vmem:[%s2564_s0 + $0x4a0] sm:$0xff]  ;;  %v175_v31 = vld [vmem:[%s2564_s0 + $0x4a8] sm:$0xff] }
  0xce   :  { %319 = vadd.xlane.f32.xlu0 %v318_v24  ;;  %v1913_v24 = vadd.s32 4294967232, %v1548_v20 }
  0xcf   :  { %v305_v36 = vpop.xlane.xlu1 %304 }
  0xd0   :  { %v822_v37 = vperm.slane %v305_v36, %v1821_v27  ;;  %v353_v38 = vpop.xlane.xlu2 %352 }
  0xd1   :  { %v575_v39 = vpop.xlane.xlu0 %574  ;;  %v870_v41 = vperm.slane %v353_v38, %v1821_v27 }
  0xd2   :  { %v1013_v42 = vperm.slane %v575_v39, %v1554_v22  ;;  %v1847_v46 = vsel %vm823_vm6, %v822_v37, %v1763_v50  ;;  %v52_v50 = vld [vmem:[%s2564_s0 + $0xd0] sm:$0xff] }
  0xd3   :  { %v1850_v47 = vsel %vm823_vm6, %v870_v41, %v869_v6  ;;  %v321_v63 = vadd.f32 %v53_v52, %v52_v50  ;;  %v114_v6 = vld [vmem:[%s2564_s0 + $0x2c0] sm:$0xff]  ;;  %v265_v50 = vld [vmem:[%s2564_s0 + $0x778] sm:$0xff] }
  0xd4   :  { %v1014_v48 = vsel %vm799_vm0, %v1013_v42, %v1012_v35  ;;  %502 = vadd.xlane.f32.xlu1 %v501_v40  ;;  %v414_v14 = vadd.f32 %v115_v7, %v114_v6  ;;  %v504_v42 = vadd.f32 %v175_v31, %v174_v30  ;;  %v146_v6 = vld [vmem:[%s2564_s0 + $0x3c0] sm:$0xff]  ;;  %v147_v7 = vld [vmem:[%s2564_s0 + $0x3c8] sm:$0xff] }
  0xd5   :  { %547 = vadd.xlane.f32.xlu2 %v546_v43  ;;  %v207_v30 = vld [vmem:[%s2564_s0 + $0x5a8] sm:$0xff] }
  0xd6   :  { %457 = vadd.xlane.f32.xlu0 %v456_v44 }
  0xd7   :  { %v443_v56 = vpop.xlane.xlu1 %442 }
  0xd8   :  { %v928_v57 = vperm.slane %v443_v56, %v1683_v55  ;;  %v488_v58 = vpop.xlane.xlu2 %487 }
  0xd9   :  { %v398_v59 = vpop.xlane.xlu0 %397  ;;  %v957_v61 = vperm.slane %v488_v58, %v1633_v15 }
  0xda   :  { %v899_v62 = vperm.slane %v398_v59, %v1739_v33  ;;  %v1876_v1 = vsel %vm815_vm4, %v928_v57, %v1791_v5  ;;  %v144_v5 = vld [vmem:[%s2564_s0 + $0x3b0] sm:$0xff] }
  0xdb   :  { %v1879_v2 = vsel %vm811_vm3, %v957_v61, %v956_v26  ;;  %v204_v26 = vld [vmem:[%s2564_s0 + $0x590] sm:$0xff]  ;;  %v639_v61 = vadd.f32 %v265_v50, %v264_v51 }
  0xdc   :  { %v1883_v3 = vsel %vm819_vm5, %v899_v62, %v1788_v4  ;;  %637 = vadd.xlane.f32.xlu1 %v636_v60  ;;  %v145_v4 = vld [vmem:[%s2564_s0 + $0x3b8] sm:$0xff]  ;;  %v549_v38 = vadd.f32 %v205_v28, %v204_v26  ;;  %v2008_v28 = vadd.s32 4294967224, %v1548_v20 }
  0xdd   :  { %322 = vadd.xlane.f32.xlu2 %v321_v63  ;;  %v459_v17 = vadd.f32 %v145_v4, %v144_v5  ;;  %v117_v5 = vld [vmem:[%s2564_s0 + $0x2d8] sm:$0xff] }
  0xde   :  { %592 = vadd.xlane.f32.xlu0 %v591_v0 }
  0xdf   :  { %v578_v11 = vpop.xlane.xlu1 %577 }
  0xe0   :  { %v1015_v9 = vperm.slane %v578_v11, %v1551_v21  ;;  %v620_v12 = vpop.xlane.xlu2 %619 }
  0xe1   :  { %v533_v13 = vpop.xlane.xlu0 %532  ;;  %v1043_v32 = vperm.slane %v620_v12, %v1548_v20 }
  0xe2   :  { %v986_v16 = vperm.slane %v533_v13, %v1585_v45  ;;  %v1906_v19 = vsel %vm803_vm1, %v1015_v9, %v1014_v48  ;;  %v462_v9 = vadd.f32 %v147_v7, %v146_v6  ;;  %v2071_v6 = vadd.s32 4294967216, %v1548_v20  ;;  %v178_v7 = vld [vmem:[%s2564_s0 + $0x4c0] sm:$0xff] }
  0xe4   :  { %v1910_v23 = vsel %vm807_vm2, %v986_v16, %v1816_v25  ;;  %415 = vadd.xlane.f32.xlu1 %v414_v14  ;;  %v235_v25 = vld [vmem:[%s2564_s0 + $0x688] sm:$0xff] }
  0xe5   :  { %460 = vadd.xlane.f32.xlu2 %v459_v17  ;;  %v594_v41 = vadd.f32 %v235_v25, %v234_v29  ;;  %v266_v29 = vld [vmem:[%s2564_s0 + $0x780] sm:$0xff] }
  0xe6   :  { %370 = vadd.xlane.f32.xlu0 %v369_v18  ;;  %v206_v25 = vld [vmem:[%s2564_s0 + $0x5a0] sm:$0xff] }
  0xe7   :  { %v308_v34 = vpop.xlane.xlu1 %307 }
  0xe8   :  { %v826_v35 = vperm.slane %v308_v34, %v1913_v24  ;;  %v356_v36 = vpop.xlane.xlu2 %355 }
  0xe9   :  { %v623_v37 = vpop.xlane.xlu0 %622  ;;  %v872_v39 = vperm.slane %v356_v36, %v1913_v24 }
  0xea   :  { %v1044_v40 = vperm.slane %v623_v37, %v1554_v22  ;;  %v1939_v43 = vsel %vm827_vm7, %v826_v35, %v1847_v46  ;;  %v55_v22 = vld [vmem:[%s2564_s0 + $0xe8] sm:$0xff]  ;;  %v86_v46 = vld [vmem:[%s2564_s0 + $0x1e0] sm:$0xff] }
  0xeb   :  { %v1943_v44 = vsel %vm827_vm7, %v872_v39, %v1850_v47  ;;  %v87_v47 = vld [vmem:[%s2564_s0 + $0x1e8] sm:$0xff]  ;;  %v324_v57 = vadd.f32 %v55_v22, %v54_v49  ;;  %v88_v49 = vld [vmem:[%s2564_s0 + $0x1f0] sm:$0xff]  ;;  %v89_v22 = vld [vmem:[%s2564_s0 + $0x1f8] sm:$0xff] }
  0xec   :  { %v1045_v48 = vsel %vm799_vm0, %v1044_v40, %v1043_v32  ;;  %550 = vadd.xlane.f32.xlu1 %v549_v38  ;;  %v372_v60 = vadd.f32 %v87_v47, %v86_v46  ;;  %v552_v40 = vadd.f32 %v207_v30, %v206_v25  ;;  %v119_v46 = vld [vmem:[%s2564_s0 + $0x2e8] sm:$0xff]  ;;  %v57_v47 = vld [vmem:[%s2564_s0 + $0xf8] sm:$0xff]  ;;  %vm1076_vm0 = vcmask 1042434  }
  0xed   :  { %595 = vadd.xlane.f32.xlu2 %v594_v41 }
  0xee   :  { %505 = vadd.xlane.f32.xlu0 %v504_v42 }
  0xef   :  { %v446_v52 = vpop.xlane.xlu1 %445 }
  0xf0   :  { %v930_v53 = vperm.slane %v446_v52, %v1739_v33  ;;  %v491_v54 = vpop.xlane.xlu2 %490 }
  0xf1   :  { %v401_v56 = vpop.xlane.xlu0 %400  ;;  %v959_v58 = vperm.slane %v491_v54, %v1683_v55  ;;  %v375_v54 = vadd.f32 %v89_v22, %v88_v49  ;;  %v180_v49 = vld [vmem:[%s2564_s0 + $0x4d0] sm:$0xff]  ;;  %v181_v22 = vld [vmem:[%s2564_s0 + $0x4d8] sm:$0xff] }
  0xf2   :  { %v901_v59 = vperm.slane %v401_v56, %v1821_v27  ;;  %v1969_v62 = vsel %vm819_vm5, %v930_v53, %v1876_v1  ;;  %v176_v1 = vld [vmem:[%s2564_s0 + $0x4b0] sm:$0xff] }
  0xf3   :  { %v1973_v63 = vsel %vm815_vm4, %v959_v58, %v1879_v2  ;;  %v177_v2 = vld [vmem:[%s2564_s0 + $0x4b8] sm:$0xff] }
  0xf4   :  { %v902_v0 = vsel %vm823_vm6, %v901_v59, %v1883_v3  ;;  %325 = vadd.xlane.f32.xlu1 %v324_v57  ;;  %v116_v3 = vld [vmem:[%s2564_s0 + $0x2d0] sm:$0xff]  ;;  %v507_v14 = vadd.f32 %v177_v2, %v176_v1 }
  0xf5   :  { %373 = vadd.xlane.f32.xlu2 %v372_v60  ;;  %v417_v16 = vadd.f32 %v117_v5, %v116_v3  ;;  %v208_v1 = vld [vmem:[%s2564_s0 + $0x5b0] sm:$0xff]  ;;  %v149_v3 = vld [vmem:[%s2564_s0 + $0x3d8] sm:$0xff] }
  0xf6   :  { %640 = vadd.xlane.f32.xlu0 %v639_v61  ;;  %v148_v2 = vld [vmem:[%s2564_s0 + $0x3d0] sm:$0xff] }
  0xf7   :  { %v581_v4 = vpop.xlane.xlu1 %580 }
  0xf8   :  { %v1017_v8 = vperm.slane %v581_v4, %v1585_v45  ;;  %v626_v10 = vpop.xlane.xlu2 %625 }
  0xf9   :  { %v536_v11 = vpop.xlane.xlu0 %535  ;;  %v1046_v12 = vperm.slane %v626_v10, %v1551_v21  ;;  %v236_v21 = vld [vmem:[%s2564_s0 + $0x690] sm:$0xff] }
  0xfa   :  { %v988_v13 = vperm.slane %v536_v11, %v1633_v15  ;;  %v2000_v17 = vsel %vm807_vm2, %v1017_v8, %v1906_v19  ;;  %v237_v19 = vld [vmem:[%s2564_s0 + $0x698] sm:$0xff] }
  0xfb   :  { %v2003_v18 = vsel %vm803_vm1, %v1046_v12, %v1045_v48  ;;  %v597_v36 = vadd.f32 %v237_v19, %v236_v21  ;;  %v268_v21 = vld [vmem:[%s2564_s0 + $0x790] sm:$0xff]  ;;  %v269_v19 = vld [vmem:[%s2564_s0 + $0x798] sm:$0xff]  ;;  %vm1078_vm1 = vcmask 1043459  }
  0xfc   :  { %v989_v26 = vsel %vm811_vm3, %v988_v13, %v1910_v23  ;;  %463 = vadd.xlane.f32.xlu1 %v462_v9  ;;  %v267_v23 = vld [vmem:[%s2564_s0 + $0x788] sm:$0xff] }
  0xfd   :  { %508 = vadd.xlane.f32.xlu2 %v507_v14  ;;  %v642_v39 = vadd.f32 %v267_v23, %v266_v29  ;;  %v465_v14 = vadd.f32 %v149_v3, %v148_v2  ;;  %v121_v29 = vld [vmem:[%s2564_s0 + $0x2f8] sm:$0xff]  ;;  %v239_v23 = vld [vmem:[%s2564_s0 + $0x6a8] sm:$0xff] }
  0xfe   :  { %418 = vadd.xlane.f32.xlu0 %v417_v16  ;;  %v241_v2 = vld [vmem:[%s2564_s0 + $0x6b8] sm:$0xff] }
  0xff   :  { %v359_v31 = vpop.xlane.xlu1 %358 }
 0x100   :  { %v874_v32 = vperm.slane %v359_v31, %v2008_v28  ;;  %v404_v34 = vpop.xlane.xlu2 %403 }
 0x101   :  { %v311_v35 = vpop.xlane.xlu0 %310  ;;  %v903_v37 = vperm.slane %v404_v34, %v1913_v24  ;;  %v645_v34 = vadd.f32 %v269_v19, %v268_v21  ;;  %v212_v19 = vld [vmem:[%s2564_s0 + $0x5d0] sm:$0xff] }
 0x102   :  { %v830_v38 = vperm.slane %v311_v35, %v2008_v28  ;;  %v2033_v41 = vsel %vm831_vm8, %v874_v32, %v1943_v44  ;;  %v118_v44 = vld [vmem:[%s2564_s0 + $0x2e0] sm:$0xff] }
 0x103   :  { %v2036_v42 = vsel %vm827_vm7, %v903_v37, %v902_v0  ;;  %v420_v58 = vadd.f32 %v119_v46, %v118_v44  ;;  %v211_v44 = vld [vmem:[%s2564_s0 + $0x5c8] sm:$0xff] }
 0x104   :  { %v832_v48 = vsel %vm831_vm8, %v830_v38, %v1939_v43  ;;  %598 = vadd.xlane.f32.xlu1 %v597_v36  ;;  %v56_v43 = vld [vmem:[%s2564_s0 + $0xf0] sm:$0xff]  ;;  %v151_v46 = vld [vmem:[%s2564_s0 + $0x3e8] sm:$0xff] }
 0x105   :  { %643 = vadd.xlane.f32.xlu2 %v642_v39  ;;  %v327_v59 = vadd.f32 %v57_v47, %v56_v43 }
 0x106   :  { %553 = vadd.xlane.f32.xlu0 %v552_v40 }
 0x107   :  { %v494_v51 = vpop.xlane.xlu1 %493 }
 0x108   :  { %v961_v50 = vperm.slane %v494_v51, %v1739_v33  ;;  %v539_v52 = vpop.xlane.xlu2 %538 }
 0x109   :  { %v449_v53 = vpop.xlane.xlu0 %448  ;;  %v990_v56 = vperm.slane %v539_v52, %v1683_v55  ;;  %v513_v52 = vadd.f32 %v181_v22, %v180_v49  ;;  %v184_v49 = vld [vmem:[%s2564_s0 + $0x4f0] sm:$0xff]  ;;  %v185_v22 = vld [vmem:[%s2564_s0 + $0x4f8] sm:$0xff] }
 0x10a   :  { %v932_v57 = vperm.slane %v449_v53, %v1821_v27  ;;  %v2063_v60 = vsel %vm819_vm5, %v961_v50, %v1973_v63  ;;  %v179_v63 = vld [vmem:[%s2564_s0 + $0x4c8] sm:$0xff] }
 0x10b   :  { %v2066_v61 = vsel %vm815_vm4, %v990_v56, %v989_v26  ;;  %v510_v11 = vadd.f32 %v179_v63, %v178_v7  ;;  %v2164_v7 = vadd.s32 4294967208, %v1548_v20  ;;  %v270_v63 = vld [vmem:[%s2564_s0 + $0x7a0] sm:$0xff] }
 0x10c   :  { %v933_v0 = vsel %vm823_vm6, %v932_v57, %v1969_v62  ;;  %376 = vadd.xlane.f32.xlu1 %v375_v54  ;;  %v209_v62 = vld [vmem:[%s2564_s0 + $0x5b8] sm:$0xff] }
 0x10d   :  { %421 = vadd.xlane.f32.xlu2 %v420_v58  ;;  %v555_v13 = vadd.f32 %v209_v62, %v208_v1  ;;  %v152_v1 = vld [vmem:[%s2564_s0 + $0x3f0] sm:$0xff] }
 0x10e   :  { %328 = vadd.xlane.f32.xlu0 %v327_v59  ;;  %v240_v62 = vld [vmem:[%s2564_s0 + $0x6b0] sm:$0xff] }
 0x10f   :  { %v629_v5 = vpop.xlane.xlu1 %628 }
 0x110   :  { %v1048_v4 = vperm.slane %v629_v5, %v1585_v45  ;;  %v314_v8 = vpop.xlane.xlu2 %313 }
 0x111   :  { %v584_v10 = vpop.xlane.xlu0 %583  ;;  %v834_v9 = vperm.slane %v314_v8, %v2071_v6 }
 0x112   :  { %v1019_v12 = vperm.slane %v584_v10, %v1633_v15  ;;  %v2096_v16 = vsel %vm807_vm2, %v1048_v4, %v2003_v18  ;;  %v120_v18 = vld [vmem:[%s2564_s0 + $0x2f0] sm:$0xff]  ;;  %vm1080_vm2 = vcmask 1044484  }
 0x113   :  { %v2099_v26 = vsel %vm835_vm9, %v834_v9, %v832_v48  ;;  %v423_v37 = vadd.f32 %v121_v29, %v120_v18  ;;  %v243_v18 = vld [vmem:[%s2564_s0 + $0x6c8] sm:$0xff] }
 0x114   :  { %v1020_v45 = vsel %vm811_vm3, %v1019_v12, %v2000_v17  ;;  %511 = vadd.xlane.f32.xlu1 %v510_v11  ;;  %v238_v17 = vld [vmem:[%s2564_s0 + $0x6a0] sm:$0xff]  ;;  %v183_v29 = vld [vmem:[%s2564_s0 + $0x4e8] sm:$0xff] }
 0x115   :  { %556 = vadd.xlane.f32.xlu2 %v555_v13  ;;  %v600_v38 = vadd.f32 %v239_v23, %v238_v17  ;;  %v603_v13 = vadd.f32 %v241_v2, %v240_v62 }
 0x116   :  { %466 = vadd.xlane.f32.xlu0 %v465_v14 }
 0x117   :  { %v407_v25 = vpop.xlane.xlu1 %406 }
 0x118   :  { %v905_v30 = vperm.slane %v407_v25, %v2008_v28  ;;  %v452_v31 = vpop.xlane.xlu2 %451 }
 0x119   :  { %v362_v32 = vpop.xlane.xlu0 %361  ;;  %v934_v35 = vperm.slane %v452_v31, %v1913_v24 }
 0x11a   :  { %v876_v36 = vperm.slane %v362_v32, %v2071_v6  ;;  %v2126_v39 = vsel %vm831_vm8, %v905_v30, %v2036_v42  ;;  %v210_v42 = vld [vmem:[%s2564_s0 + $0x5c0] sm:$0xff] }
 0x11b   :  { %v2129_v40 = vsel %vm827_vm7, %v934_v35, %v933_v0  ;;  %v558_v56 = vadd.f32 %v211_v44, %v210_v42  ;;  %v215_v42 = vld [vmem:[%s2564_s0 + $0x5e8] sm:$0xff]  ;;  %v273_v44 = vld [vmem:[%s2564_s0 + $0x7b8] sm:$0xff] }
 0x11c   :  { %v877_v48 = vsel %vm835_vm9, %v876_v36, %v2033_v41  ;;  %646 = vadd.xlane.f32.xlu1 %v645_v34  ;;  %v150_v41 = vld [vmem:[%s2564_s0 + $0x3e0] sm:$0xff] }
 0x11d   :  { %424 = vadd.xlane.f32.xlu2 %v423_v37  ;;  %v468_v57 = vadd.f32 %v151_v46, %v150_v41 }
 0x11e   :  { %601 = vadd.xlane.f32.xlu0 %v600_v38 }
 0x11f   :  { %v542_v43 = vpop.xlane.xlu1 %541 }
 0x120   :  { %v992_v47 = vperm.slane %v542_v43, %v1739_v33  ;;  %v587_v51 = vpop.xlane.xlu2 %586 }
 0x121   :  { %v497_v50 = vpop.xlane.xlu0 %496  ;;  %v1021_v53 = vperm.slane %v587_v51, %v1683_v55  ;;  %v519_v51 = vadd.f32 %v185_v22, %v184_v49  ;;  %v2312_v49 = vadd.s32 4294967192, %v1548_v20  ;;  %v280_v22 = vld [vmem:[%s2564_s0 + $0x7f0] sm:$0xff] }
 0x122   :  { %v963_v54 = vperm.slane %v497_v50, %v1821_v27  ;;  %v2156_v58 = vsel %vm819_vm5, %v992_v47, %v2066_v61  ;;  %v271_v61 = vld [vmem:[%s2564_s0 + $0x7a8] sm:$0xff] }
 0x123   :  { %v2159_v59 = vsel %vm815_vm4, %v1021_v53, %v1020_v45  ;;  %v648_v10 = vadd.f32 %v271_v61, %v270_v63  ;;  %v2257_v63 = vadd.s32 4294967200, %v1548_v20  ;;  %v216_v61 = vld [vmem:[%s2564_s0 + $0x5f0] sm:$0xff] }
 0x124   :  { %v964_v0 = vsel %vm823_vm6, %v963_v54, %v2063_v60  ;;  %514 = vadd.xlane.f32.xlu1 %v513_v52  ;;  %v153_v60 = vld [vmem:[%s2564_s0 + $0x3f8] sm:$0xff] }
 0x125   :  { %559 = vadd.xlane.f32.xlu2 %v558_v56  ;;  %v471_v12 = vadd.f32 %v153_v60, %v152_v1  ;;  %v244_v1 = vld [vmem:[%s2564_s0 + $0x6d0] sm:$0xff]  ;;  %v245_v60 = vld [vmem:[%s2564_s0 + $0x6d8] sm:$0xff] }
 0x126   :  { %469 = vadd.xlane.f32.xlu0 %v468_v57 }
 0x127   :  { %v317_v3 = vpop.xlane.xlu1 %316 }
 0x128   :  { %v838_v5 = vperm.slane %v317_v3, %v2164_v7  ;;  %v365_v4 = vpop.xlane.xlu2 %364 }
 0x129   :  { %v632_v8 = vpop.xlane.xlu0 %631  ;;  %v878_v11 = vperm.slane %v365_v4, %v2164_v7 }
 0x12a   :  { %v1050_v9 = vperm.slane %v632_v8, %v1633_v15  ;;  %v2189_v14 = vsel %vm839_vm10, %v838_v5, %v2099_v26  ;;  %v213_v15 = vld [vmem:[%s2564_s0 + $0x5d8] sm:$0xff]  ;;  %v242_v26 = vld [vmem:[%s2564_s0 + $0x6c0] sm:$0xff] }
 0x12b   :  { %v2192_v45 = vsel %vm839_vm10, %v878_v11, %v877_v48  ;;  %v561_v31 = vadd.f32 %v213_v15, %v212_v19  ;;  %v606_v35 = vadd.f32 %v243_v18, %v242_v26  ;;  %v276_v19 = vld [vmem:[%s2564_s0 + $0x7d0] sm:$0xff]  ;;  %v277_v15 = vld [vmem:[%s2564_s0 + $0x7d8] sm:$0xff]  ;;  %v247_v26 = vld [vmem:[%s2564_s0 + $0x6e8] sm:$0xff] }
 0x12c   :  { %v1051_v21 = vsel %vm811_vm3, %v1050_v9, %v2096_v16  ;;  %649 = vadd.xlane.f32.xlu1 %v648_v10  ;;  %v182_v16 = vld [vmem:[%s2564_s0 + $0x4e0] sm:$0xff]  ;;  %v609_v9 = vadd.f32 %v245_v60, %v244_v1  ;;  %v249_v18 = vld [vmem:[%s2564_s0 + $0x6f8] sm:$0xff]  ;;  %vm1082_vm3 = vcmask 1045509  }
 0x12d   :  { %472 = vadd.xlane.f32.xlu2 %v471_v12  ;;  %v516_v36 = vadd.f32 %v183_v29, %v182_v16 }
 0x12e   :  { %604 = vadd.xlane.f32.xlu0 %v603_v13 }
 0x12f   :  { %v455_v17 = vpop.xlane.xlu1 %454 }
 0x130   :  { %v936_v23 = vperm.slane %v455_v17, %v2008_v28  ;;  %v500_v25 = vpop.xlane.xlu2 %499 }
 0x131   :  { %v410_v30 = vpop.xlane.xlu0 %409  ;;  %v965_v32 = vperm.slane %v500_v25, %v1913_v24  ;;  %v657_v25 = vadd.f32 %v277_v15, %v276_v19 }
 0x132   :  { %v907_v34 = vperm.slane %v410_v30, %v2071_v6  ;;  %v2219_v37 = vsel %vm831_vm8, %v936_v23, %v2129_v40  ;;  %v214_v40 = vld [vmem:[%s2564_s0 + $0x5e0] sm:$0xff] }
 0x133   :  { %v2222_v38 = vsel %vm827_vm7, %v965_v32, %v964_v0  ;;  %v564_v53 = vadd.f32 %v215_v42, %v214_v40  ;;  %v281_v40 = vld [vmem:[%s2564_s0 + $0x7f8] sm:$0xff] }
 0x134   :  { %v908_v48 = vsel %vm835_vm9, %v907_v34, %v2126_v39  ;;  %562 = vadd.xlane.f32.xlu1 %v561_v31  ;;  %v272_v39 = vld [vmem:[%s2564_s0 + $0x7b0] sm:$0xff] }
 0x135   :  { %607 = vadd.xlane.f32.xlu2 %v606_v35  ;;  %v651_v54 = vadd.f32 %v273_v44, %v272_v39 }
 0x136   :  { %517 = vadd.xlane.f32.xlu0 %v516_v36 }
 0x137   :  { %v590_v41 = vpop.xlane.xlu1 %589 }
 0x138   :  { %v1023_v46 = vperm.slane %v590_v41, %v1739_v33  ;;  %v635_v43 = vpop.xlane.xlu2 %634 }
 0x139   :  { %v545_v47 = vpop.xlane.xlu0 %544  ;;  %v1052_v50 = vperm.slane %v635_v43, %v1683_v55  ;;  %v274_v55 = vld [vmem:[%s2564_s0 + $0x7c0] sm:$0xff] }
 0x13a   :  { %v994_v52 = vperm.slane %v545_v47, %v1821_v27  ;;  %v2249_v56 = vsel %vm819_vm5, %v1023_v46, %v2159_v59  ;;  %v275_v59 = vld [vmem:[%s2564_s0 + $0x7c8] sm:$0xff]  ;;  %v663_v46 = vadd.f32 %v281_v40, %v280_v22 }
 0x13b   :  { %v2252_v57 = vsel %vm815_vm4, %v1052_v50, %v1051_v21  ;;  %v654_v4 = vadd.f32 %v275_v59, %v274_v55  ;;  %vm1084_vm4 = vcmask 1046534  }
 0x13c   :  { %v995_v0 = vsel %vm823_vm6, %v994_v52, %v2156_v58  ;;  %520 = vadd.xlane.f32.xlu1 %v519_v51  ;;  %v217_v58 = vld [vmem:[%s2564_s0 + $0x5f8] sm:$0xff] }
 0x13d   :  { %565 = vadd.xlane.f32.xlu2 %v564_v53  ;;  %v567_v11 = vadd.f32 %v217_v58, %v216_v61 }
 0x13e   :  { %652 = vadd.xlane.f32.xlu0 %v651_v54 }
 0x13f   :  { %v368_v62 = vpop.xlane.xlu1 %367 }
 0x140   :  { %v880_v2 = vperm.slane %v368_v62, %v2257_v63  ;;  %v413_v3 = vpop.xlane.xlu2 %412 }
 0x141   :  { %v320_v5 = vpop.xlane.xlu0 %319  ;;  %v909_v8 = vperm.slane %v413_v3, %v2164_v7 }
 0x142   :  { %v842_v10 = vperm.slane %v320_v5, %v2257_v63  ;;  %v881_v12 = vsel %vm843_vm11, %v880_v2, %v2192_v45  ;;  %v246_v45 = vld [vmem:[%s2564_s0 + $0x6e0] sm:$0xff] }
 0x143   :  { %v910_v13 = vsel %vm839_vm10, %v909_v8, %v908_v48  ;;  %v612_v32 = vadd.f32 %v247_v26, %v246_v45 }
 0x144   :  { %v844_v21 = vsel %vm843_vm11, %v842_v10, %v2189_v14  ;;  %655 = vadd.xlane.f32.xlu1 %v654_v4  ;;  %v248_v14 = vld [vmem:[%s2564_s0 + $0x6f0] sm:$0xff] }
 0x145   :  { %568 = vadd.xlane.f32.xlu2 %v567_v11  ;;  %v615_v34 = vadd.f32 %v249_v18, %v248_v14  ;;  %v2347_v11 = vadd.s32 4294967184, %v1548_v20 }
 0x146   :  { %610 = vadd.xlane.f32.xlu0 %v609_v9 }
 0x147   :  { %v503_v16 = vpop.xlane.xlu1 %502 }
 0x148   :  { %v967_v29 = vperm.slane %v503_v16, %v2008_v28  ;;  %v548_v17 = vpop.xlane.xlu2 %547 }
 0x149   :  { %v458_v23 = vpop.xlane.xlu0 %457  ;;  %v996_v30 = vperm.slane %v548_v17, %v1913_v24 }
 0x14a   :  { %v938_v31 = vperm.slane %v458_v23, %v2071_v6  ;;  %v968_v35 = vsel %vm831_vm8, %v967_v29, %v2222_v38  ;;  %v278_v38 = vld [vmem:[%s2564_s0 + $0x7e0] sm:$0xff] }
 0x14b   :  { %v997_v36 = vsel %vm827_vm7, %v996_v30, %v995_v0 }
 0x14c   :  { %v939_v48 = vsel %vm835_vm9, %v938_v31, %v2219_v37  ;;  %658 = vadd.xlane.f32.xlu1 %v657_v25  ;;  %v279_v37 = vld [vmem:[%s2564_s0 + $0x7e8] sm:$0xff] }
 0x14d   :  { %616 = vadd.xlane.f32.xlu2 %v615_v34  ;;  %v660_v51 = vadd.f32 %v279_v37, %v278_v38 }
 0x14e   :  { %613 = vadd.xlane.f32.xlu0 %v612_v32 }
 0x14f   :  { %v638_v42 = vpop.xlane.xlu1 %637 }
 0x150   :  { %v1054_v39 = vperm.slane %v638_v42, %v1739_v33  ;;  %v323_v44 = vpop.xlane.xlu2 %322  ;;  %v2376_v42 = vadd.s32 4294967176, %v1548_v20 }
 0x151   :  { %v593_v41 = vpop.xlane.xlu0 %592  ;;  %v846_v43 = vperm.slane %v323_v44, %v2312_v49 }
 0x152   :  { %v1025_v47 = vperm.slane %v593_v41, %v1821_v27  ;;  %v1055_v50 = vsel %vm819_vm5, %v1054_v39, %v2252_v57  ;;  %vm1086_vm5 = vcmask 1047559  }
 0x153   :  { %v848_v52 = vsel %vm847_vm12, %v846_v43, %v844_v21 }
 0x154   :  { %v1026_v53 = vsel %vm823_vm6, %v1025_v47, %v2249_v56  ;;  %664 = vadd.xlane.f32.xlu1 %v663_v46 }
 0x156   :  { %661 = vadd.xlane.f32.xlu0 %v660_v51 }
 0x157   :  { %v416_v33 = vpop.xlane.xlu1 %415 }
 0x158   :  { %v911_v54 = vperm.slane %v416_v33, %v2257_v63  ;;  %v461_v0 = vpop.xlane.xlu2 %460 }
 0x159   :  { %v371_v55 = vpop.xlane.xlu0 %370  ;;  %v940_v59 = vperm.slane %v461_v0, %v2164_v7 }
 0x15a   :  { %v882_v61 = vperm.slane %v371_v55, %v2312_v49  ;;  %v912_v58 = vsel %vm843_vm11, %v911_v54, %v910_v13  ;;  %v1111_v55 = vld [vmem:[%s2565_s1 + $0x78] sm:$0xff] }
 0x15b   :  { %v941_v57 = vsel %vm839_vm10, %v940_v59, %v939_v48  ;;  %1112 = vmatpush.msra.mxu0 %v1111_v55 }
 0x15c   :  { %v883_v1 = vsel %vm847_vm12, %v882_v61, %v881_v12 }
 0x15f   :  { %v551_v60 = vpop.xlane.xlu1 %550 }
 0x160   :  { %v998_v56 = vperm.slane %v551_v60, %v2008_v28  ;;  %v596_v62 = vpop.xlane.xlu2 %595 }
 0x161   :  { %v506_v2 = vpop.xlane.xlu0 %505  ;;  %v1027_v3 = vperm.slane %v596_v62, %v1913_v24 }
 0x162   :  { %v969_v5 = vperm.slane %v506_v2, %v2071_v6  ;;  %v999_v4 = vsel %vm831_vm8, %v998_v56, %v997_v36  ;;  %v1108_v56 = vld [vmem:[%s2565_s1 + $0x60] sm:$0xff] }
 0x163   :  { %v1028_v8 = vsel %vm827_vm7, %v1027_v3, %v1026_v53 }
 0x164   :  { %v970_v10 = vsel %vm835_vm9, %v969_v5, %v968_v35  ;;  %v1107_v5 = vld [vmem:[%s2565_s1 + $0x58] sm:$0xff] }
 0x167   :  { %v326_v9 = vpop.xlane.xlu1 %325 }
 0x168   :  { %v850_v12 = vperm.slane %v326_v9, %v2347_v11  ;;  %v374_v13 = vpop.xlane.xlu2 %373 }
 0x169   :  { %v641_v21 = vpop.xlane.xlu0 %640  ;;  %v884_v19 = vperm.slane %v374_v13, %v2347_v11 }
 0x16a   :  { %v1056_v15 = vperm.slane %v641_v21, %v1821_v27  ;;  %v852_v45 = vsel %vm851_vm13, %v850_v12, %v848_v52 }
 0x16b   :  { %v885_v26 = vsel %vm851_vm13, %v884_v19, %v883_v1  ;;  %v1109_v1 = vld [vmem:[%s2565_s1 + $0x68] sm:$0xff] }
 0x16c   :  { %v1057_v14 = vsel %vm823_vm6, %v1056_v15, %v1055_v50  ;;  %v1103_v15 = vld [vmem:[%s2565_s1 + $0x38] sm:$0xff]  ;;  %vm1134_vm6 = vcmask 64512  }
 0x16f   :  { %v464_v18 = vpop.xlane.xlu1 %463 }
 0x170   :  { %v942_v16 = vperm.slane %v464_v18, %v2257_v63  ;;  %v509_v29 = vpop.xlane.xlu2 %508  ;;  %v1102_v18 = vld [vmem:[%s2565_s1 + $0x30] sm:$0xff] }
 0x171   :  { %v419_v17 = vpop.xlane.xlu0 %418  ;;  %v971_v23 = vperm.slane %v509_v29, %v2164_v7 }
 0x172   :  { %v913_v25 = vperm.slane %v419_v17, %v2312_v49  ;;  %v943_v30 = vsel %vm843_vm11, %v942_v16, %v941_v57  ;;  %v1101_v17 = vld [vmem:[%s2565_s1 + $0x28] sm:$0xff] }
 0x173   :  { %v2360_v31 = vsel %vm839_vm10, %v971_v23, %v970_v10  ;;  %v1104_v10 = vld [vmem:[%s2565_s1 + $0x40] sm:$0xff] }
 0x174   :  { %v914_v27 = vsel %vm847_vm12, %v913_v25, %v912_v58  ;;  %v1110_v58 = vld [vmem:[%s2565_s1 + $0x70] sm:$0xff]  ;;  %v1100_v23 = vld [vmem:[%s2565_s1 + $0x20] sm:$0xff] }
 0x175   :  { %1113 = vmatpush.msra.mxu0 %v1110_v58 }
 0x177   :  { %v599_v32 = vpop.xlane.xlu1 %598  ;;  %1114 = vmatpush.msra.mxu0 %v1109_v1 }
 0x178   :  { %v1029_v34 = vperm.slane %v599_v32, %v2008_v28  ;;  %v644_v35 = vpop.xlane.xlu2 %643  ;;  %v1099_v32 = vld [vmem:[%s2565_s1 + $0x18] sm:$0xff] }
 0x179   :  { %v554_v36 = vpop.xlane.xlu0 %553  ;;  %v1058_v48 = vperm.slane %v644_v35, %v1913_v24  ;;  %1115 = vmatpush.msra.mxu0 %v1108_v56 }
 0x17a   :  { %v1000_v22 = vperm.slane %v554_v36, %v2071_v6  ;;  %v2367_v40 = vsel %vm831_vm8, %v1029_v34, %v1028_v8  ;;  %v1105_v8 = vld [vmem:[%s2565_s1 + $0x48] sm:$0xff]  ;;  %v1098_v34 = vld [vmem:[%s2565_s1 + $0x10] sm:$0xff] }
 0x17b   :  { %v2370_v38 = vsel %vm827_vm7, %v1058_v48, %v1057_v14  ;;  %1116 = vmatpush.msra.mxu0 %v1107_v5  ;;  %v1097_v36 = vld [vmem:[%s2565_s1 + $0x8] sm:$0xff] }
 0x17c   :  { %v2373_v37 = vsel %vm835_vm9, %v1000_v22, %v999_v4  ;;  %v1106_v4 = vld [vmem:[%s2565_s1 + $0x50] sm:$0xff]  ;;  %v1096_v22 = vld [vmem:[%s2565_s1] sm:$0xff] }
 0x17d   :  { %1117 = vmatpush.msra.mxu0 %v1106_v4 }
 0x17f   :  { %v377_v39 = vpop.xlane.xlu1 %376  ;;  %1118 = vmatpush.msra.mxu0 %v1105_v8 }
 0x180   :  { %v886_v44 = vperm.slane %v377_v39, %v2376_v42  ;;  %v422_v41 = vpop.xlane.xlu2 %421 }
 0x181   :  { %v329_v24 = vpop.xlane.xlu0 %328  ;;  %v915_v53 = vperm.slane %v422_v41, %v2347_v11  ;;  %1119 = vmatpush.msra.mxu0 %v1104_v10 }
 0x182   :  { %v854_v46 = vperm.slane %v329_v24, %v2376_v42  ;;  %v887_v43 = vsel %vm855_vm14, %v886_v44, %v885_v26 }
 0x183   :  { %v916_v61 = vsel %vm851_vm13, %v915_v53, %v914_v27  ;;  %1120 = vmatpush.msra.mxu0 %v1103_v15 }
 0x184   :  { %v856_v47 = vsel %vm855_vm14, %v854_v46, %v852_v45 }
 0x185   :  { %v1075_v51 = vsel %vm1074_vm15, %v887_v43, %v856_v47  ;;  %1121 = vmatpush.msra.mxu0 %v1102_v18 }
 0x187   :  { %v2382_v50 = vpop.xlane.xlu1 %511  ;;  %1122 = vmatpush.msra.mxu0 %v1101_v17 }
 0x188   :  { %v2384_v52 = vpop.xlane.xlu2 %556  ;;  %v973_v35 = vperm.slane %v2382_v50, %v2257_v63 }
 0x189   :  { %v467_v20 = vpop.xlane.xlu0 %466  ;;  %1123 = vmatpush.msra.mxu0 %v1100_v23 }
 0x18a   :  { %v944_v9 = vperm.slane %v467_v20, %v2312_v49  ;;  %v974_v44 = vsel %vm843_vm11, %v973_v35, %v2360_v31  ;;  %v1002_v20 = vperm.slane %v2384_v52, %v2164_v7 }
 0x18b   :  { %1124 = vmatpush.msra.mxu0 %v1099_v32 }
 0x18c   :  { %v945_v45 = vsel %vm847_vm12, %v944_v9, %v943_v30 }
 0x18d   :  { %1125 = vmatpush.msra.mxu0 %v1098_v34 }
 0x18f   :  { %v2387_v33 = vpop.xlane.xlu1 %646  ;;  %1126 = vmatpush.msra.mxu0 %v1097_v36  ;;  %v1193_v36 = vld [vmem:[%s2568_s3 + $0x78] sm:$0xff] }
 0x190   :  { %v425_v54 = vpop.xlane.xlu2 %424  ;;  %1198 = vmatpush.msra.mxu2 %v1193_v36 }
 0x191   :  { %v2389_v0 = vpop.xlane.xlu0 %601  ;;  %v917_v59 = vperm.slane %v425_v54, %v2376_v42  ;;  %1127 = vmatpush.msra.mxu0 %v1096_v22  ;;  %v1191_v22 = vld [vmem:[%s2568_s3 + $0x68] sm:$0xff] }
 0x193   :  { %v918_v57 = vsel %vm855_vm14, %v917_v59, %v916_v61  ;;  %v1003_v59 = vsel %vm839_vm10, %v1002_v20, %v2373_v37  ;;  %v1181_v20 = vld [vmem:[%s2568_s3 + $0x18] sm:$0xff] }
 0x194   :  { %v1077_v60 = vsel %vm1076_vm0, %v918_v57, %v1075_v51 }
 0x197   :  { %v515_v62 = vpop.xlane.xlu1 %514 }
 0x198   :  { %v560_v2 = vpop.xlane.xlu2 %559  ;;  %v975_v48 = vperm.slane %v515_v62, %v2312_v49  ;;  %v1031_v62 = vperm.slane %v2389_v0, %v2071_v6 }
 0x199   :  { %v470_v3 = vpop.xlane.xlu0 %469  ;;  %v1004_v54 = vperm.slane %v560_v2, %v2257_v63 }
 0x19a   :  { %v946_v12 = vperm.slane %v470_v3, %v2347_v11  ;;  %v976_v24 = vsel %vm847_vm12, %v975_v48, %v974_v44  ;;  %v1032_v8 = vsel %vm835_vm9, %v1031_v62, %v2367_v40  ;;  %v1192_v48 = vld [vmem:[%s2568_s3 + $0x70] sm:$0xff]  ;;  %v1189_v44 = vld [vmem:[%s2568_s3 + $0x58] sm:$0xff] }
 0x19b   :  { %v1005_v58 = vsel %vm843_vm11, %v1004_v54, %v1003_v59  ;;  %1199 = vmatpush.msra.mxu2 %v1192_v48  ;;  %v1179_v54 = vld [vmem:[%s2568_s3 + $0x8] sm:$0xff] }
 0x19c   :  { %v947_v14 = vsel %vm851_vm13, %v946_v12, %v945_v45 }
 0x19d   :  { %1200 = vmatpush.msra.mxu2 %v1191_v22 }
 0x19f   :  { %v2420_v13 = vpop.xlane.xlu1 %649 }
 0x1a0   :  { %v473_v21 = vpop.xlane.xlu2 %472  ;;  %v1062_v40 = vperm.slane %v2420_v13, %v2071_v6 }
 0x1a1   :  { %v605_v19 = vpop.xlane.xlu0 %604  ;;  %v948_v26 = vperm.slane %v473_v21, %v2376_v42 }
 0x1a2   :  { %v1033_v3 = vperm.slane %v605_v19, %v2164_v7  ;;  %v1060_v19 = vperm.slane %v2387_v33, %v2008_v28 }
 0x1a3   :  { %v949_v16 = vsel %vm855_vm14, %v948_v26, %v947_v14 }
 0x1a4   :  { %v1079_v29 = vsel %vm1078_vm1, %v949_v16, %v1077_v60  ;;  %v1034_v9 = vsel %vm839_vm10, %v1033_v3, %v1032_v8  ;;  %v1061_v23 = vsel %vm831_vm8, %v1060_v19, %v2370_v38  ;;  %v1225_v8 = vld [vmem:[%s2567_s4] ss:$0 sm:$0xff] }
 0x1a5   :  { %v1063_v33 = vsel %vm835_vm9, %v1062_v40, %v1061_v23 }
 0x1a7   :  { %v563_v25 = vpop.xlane.xlu1 %562 }
 0x1a8   :  { %v608_v30 = vpop.xlane.xlu2 %607  ;;  %v1006_v31 = vperm.slane %v563_v25, %v2312_v49 }
 0x1a9   :  { %v518_v27 = vpop.xlane.xlu0 %517  ;;  %v1035_v5 = vperm.slane %v608_v30, %v2257_v63 }
 0x1aa   :  { %v977_v39 = vperm.slane %v518_v27, %v2347_v11  ;;  %v1007_v60 = vsel %vm847_vm12, %v1006_v31, %v1005_v58  ;;  %v1178_v31 = vld [vmem:[%s2568_s3] sm:$0xff] }
 0x1ab   :  { %v1036_v15 = vsel %vm843_vm11, %v1035_v5, %v1034_v9 }
 0x1ac   :  { %v978_v51 = vsel %vm851_vm13, %v977_v39, %v976_v24  ;;  %v1190_v39 = vld [vmem:[%s2568_s3 + $0x60] sm:$0xff]  ;;  %v1187_v24 = vld [vmem:[%s2568_s3 + $0x48] sm:$0xff] }
 0x1ad   :  { %1201 = vmatpush.msra.mxu2 %v1190_v39 }
 0x1af   :  { %v521_v41 = vpop.xlane.xlu1 %520  ;;  %1202 = vmatpush.msra.mxu2 %v1189_v44 }
 0x1b0   :  { %v979_v46 = vperm.slane %v521_v41, %v2376_v42  ;;  %v566_v43 = vpop.xlane.xlu2 %565  ;;  %v1188_v41 = vld [vmem:[%s2568_s3 + $0x50] sm:$0xff] }
 0x1b1   :  { %v653_v47 = vpop.xlane.xlu0 %652  ;;  %v1008_v55 = vperm.slane %v566_v43, %v2347_v11  ;;  %1203 = vmatpush.msra.mxu2 %v1188_v41  ;;  %v1185_v43 = vld [vmem:[%s2568_s3 + $0x38] sm:$0xff] }
 0x1b2   :  { %v980_v50 = vsel %vm855_vm14, %v979_v46, %v978_v51  ;;  %v1064_v18 = vperm.slane %v653_v47, %v2164_v7  ;;  %v1186_v46 = vld [vmem:[%s2568_s3 + $0x40] sm:$0xff]  ;;  %v1184_v47 = vld [vmem:[%s2568_s3 + $0x30] sm:$0xff]  ;;  %v1183_v51 = vld [vmem:[%s2568_s3 + $0x28] sm:$0xff] }
 0x1b3   :  { %v1081_v53 = vsel %vm1080_vm2, %v980_v50, %v1079_v29  ;;  %v1009_v52 = vsel %vm851_vm13, %v1008_v55, %v1007_v60  ;;  %1204 = vmatpush.msra.mxu2 %v1187_v24  ;;  %v1182_v50 = vld [vmem:[%s2568_s3 + $0x20] sm:$0xff] }
 0x1b4   :  { %v1065_v30 = vsel %vm839_vm10, %v1064_v18, %v1063_v33 }
 0x1b5   :  { %1205 = vmatpush.msra.mxu2 %v1186_v46 }
 0x1b7   :  { %v656_v61 = vpop.xlane.xlu1 %655  ;;  %1206 = vmatpush.msra.mxu2 %v1185_v43 }
 0x1b8   :  { %v569_v57 = vpop.xlane.xlu2 %568  ;;  %v1066_v29 = vperm.slane %v656_v61, %v2257_v63 }
 0x1b9   :  { %v611_v1 = vpop.xlane.xlu0 %610  ;;  %v1010_v56 = vperm.slane %v569_v57, %v2376_v42  ;;  %1207 = vmatpush.msra.mxu2 %v1184_v47 }
 0x1ba   :  { %v1037_v4 = vperm.slane %v611_v1, %v2312_v49  ;;  %v1067_v7 = vsel %vm843_vm11, %v1066_v29, %v1065_v30 }
 0x1bb   :  { %v1011_v2 = vsel %vm855_vm14, %v1010_v56, %v1009_v52  ;;  %1208 = vmatpush.msra.mxu2 %v1183_v51 }
 0x1bc   :  { %v1083_v37 = vsel %vm1082_vm3, %v1011_v2, %v1081_v53  ;;  %v1038_v26 = vsel %vm847_vm12, %v1037_v4, %v1036_v15  ;;  %v1180_v53 = vld [vmem:[%s2568_s3 + $0x10] sm:$0xff] }
 0x1bd   :  { %1209 = vmatpush.msra.mxu2 %v1182_v50 }
 0x1bf   :  { %v659_v10 = vpop.xlane.xlu1 %658  ;;  %1210 = vmatpush.msra.mxu2 %v1181_v20 }
 0x1c0   :  { %v617_v21 = vpop.xlane.xlu2 %616  ;;  %v1068_v28 = vperm.slane %v659_v10, %v2312_v49 }
 0x1c1   :  { %v614_v12 = vpop.xlane.xlu0 %613  ;;  %v1041_v45 = vperm.slane %v617_v21, %v2376_v42  ;;  %1211 = vmatpush.msra.mxu2 %v1180_v53 }
 0x1c2   :  { %v1039_v0 = vperm.slane %v614_v12, %v2347_v11  ;;  %v1069_v63 = vsel %vm847_vm12, %v1068_v28, %v1067_v7 }
 0x1c3   :  { %1212 = vmatpush.msra.mxu2 %v1179_v54 }
 0x1c4   :  { %v1040_v14 = vsel %vm851_vm13, %v1039_v0, %v1038_v26 }
 0x1c5   :  { %v1042_v16 = vsel %vm855_vm14, %v1041_v45, %v1040_v14  ;;  %1213 = vmatpush.msra.mxu2 %v1178_v31 }
 0x1c6   :  { %v1085_v17 = vsel %vm1084_vm4, %v1042_v16, %v1083_v37 }
 0x1c7   :  { %v665_v25 = vpop.xlane.xlu1 %664 }
 0x1c8   :  { %v1072_v13 = vperm.slane %v665_v25, %v2376_v42  ;;  %v1133_v42 = vld [vmem:[%s2566_s2] sm:$0xff] }
 0x1c9   :  { %v662_v6 = vpop.xlane.xlu0 %661  ;;  %1153 = vmatpush.msra.mxu1 %v1133_v42 }
 0x1ca   :  { %v1070_v27 = vperm.slane %v662_v6, %v2347_v11 }
 0x1cc   :  { %v1071_v32 = vsel %vm851_vm13, %v1070_v27, %v1069_v63 }
 0x1cd   :  { %v1073_v38 = vsel %vm855_vm14, %v1072_v13, %v1071_v32 }
 0x1ce   :  { %v1087_v49 = vsel %vm1086_vm5, %v1073_v38, %v1085_v17 }
 0x1cf   :  { %v2503_v34 = vmul.f32 0.00390625, %v1087_v49 }
 0x1d1   :  { %1128 = vmatmul.f32.vlgmr.msra.gmra.mxu0 %v2503_v34 }
 0x24e   :  { %v1129_v35 = vpop.f32.mrf.mxu0 }
 0x24f   :  { %v1132_v11 = vmax.f32 %v1129_v35, 0.0 }
 0x251   :  { %1223 = vmatmul.msk.f32.vlgmr.msra.gmra.mxu1 %vm1134_vm6, %v1132_v11 }
 0x2ce   :  { %v1155_v55 = vpop.f32.mrf.mxu1 }
 0x2cf   :  { %v1224_v59 = vmul.f32 -1.442695, %v1155_v55 }
 0x2d1   :  { %1226 = vpow2.f32 %v1224_v59 }
 0x2d7   :  { %v1227_v61 = vpop.eup %1226 }
 0x2d8   :  { %v1161_v58 = vadd.f32 1.0, %v1227_v61 }
 0x2da   :  { %1228 = vrcp.f32 %v1161_v58  ;;  %v1173_v56 = vand.u32 2147483648, %v1161_v58  ;;  %v1171_v62 = vand.u32 2147483647, %v1161_v58  ;;  %vm1167_vm8 = vweird.f32 %v1161_v58 }
 0x2dc   :  { %v1174_v3 = vor.u32 1.1754944e-38, %v1173_v56  ;;  %vm1172_vm10 = vcmp.eq.f32.partialorder %v1171_v62, 8.507059e+37 }
 0x2e0   :  { %v1229_v57 = vpop.eup %1228 }
 0x2e1   :  { %v1163_v1 = vmul.f32 %v1229_v57, %v1161_v58  ;;  %vm1168_vm7 = vweird.f32 %v1229_v57 }
 0x2e2   :  { %vm1169_vm9 = vmor %vm1167_vm8, %vm1168_vm7 }
 0x2e3   :  { %v1164_v60 = vsub.f32 1.0, %v1163_v1 }
 0x2e5   :  { %v1165_v52 = vmul.f32 %v1229_v57, %v1164_v60 }
 0x2e7   :  { %v1166_v2 = vadd.f32 %v1229_v57, %v1165_v52 }
 0x2e9   :  { %v1170_v37 = vsel %vm1169_vm9, %v1229_v57, %v1166_v2 }
 0x2ea   :  { %v1175_v5 = vsel %vm1172_vm10, %v1174_v3, %v1170_v37 }
 0x2eb   :  { %v1177_v4 = vmul.f32 %v1175_v5, %v2503_v34 }
 0x2ed   :  { %1214 = vmatmul.f32.vlgmr.msra.gmra.mxu2 %v1177_v4 }
 0x370   :  { %v1215_v10 = vpop.f32.mrf.mxu2 }
 0x371   :  { %v1216_v9 = vadd.f32 %v1225_v8, %v1215_v10 }
 0x373   :  { %1218 = vst [vmem:[%s2569_s5] sm:$0xff] %v1216_v9 }

</bundles_post_ra>
